<compile_context>
chip_gen: v6e
topology: v6e:2x2x1
jax: 0.10.0
libtpu: 0.0.40
codegen_flags: <defaults>
</compile_context>

<pallas_src>
import jax
import jax.numpy as jnp
from jax.experimental import pallas as pl
from jax.experimental.pallas import tpu as pltpu


def _transition_kernel(x_ref, wc_ref, pw_ref, b_ref, o_ref):
    # x_ref : (1, Cin, 2*TH, W)        raw NCHW input band
    # wc_ref: (Cout*TH, Cin*2*TH)      0.25 * conv weight x height-pool matrix
    # pw_ref: (W, Wo)                  width-pool matrix (0/1)
    # b_ref : (Cout*TH, 1)             conv bias replicated per output row
    # o_ref : (1, Cout, TH, Wo)        NCHW output band
    _, cin, two_th, w_in = x_ref.shape

    x = x_ref[0].reshape(cin * two_th, w_in)          # leading-dim merge (layout-trivial)
    lr = jnp.where(x > 0, x, 0.01 * x)                # LeakyReLU(negative_slope=0.01)
    lr = lr.astype(jnp.float32)

    # width pooling on the MXU: (Cin*2TH, W) @ (W, Wo) -> (Cin*2TH, Wo)
    a = jnp.dot(lr, pw_ref[...], preferred_element_type=jnp.float32)
    # channel mix + height pooling + 0.25 scale: (Cout*TH, Cin*2TH) @ (Cin*2TH, Wo)
    y = jnp.dot(wc_ref[...], a, preferred_element_type=jnp.float32)
    y = y + b_ref[...]                                # bias is pool-invariant

    _, cout, th, wo = o_ref.shape
    o_ref[0] = y.reshape(cout, th, wo).astype(o_ref.dtype)   # leading-dim split


def _choose_tile_h(Ho, Cin, Cout, W, itemsize):
    """Pick TH (multiple of 8): grow per-step work toward ~1 MiB input blocks while
    keeping the stacked weight bounded."""
    th = 8
    while True:
        nt = th * 2
        if nt > Ho + 7 or nt > 256:
            break
        in_bytes = Cin * 2 * nt * W * itemsize
        wc_bytes = (Cout * nt) * (Cin * 2 * nt) * 4
        if in_bytes > (1 << 20) or wc_bytes > (2 << 20):
            break
        th = nt
    return th


def transition_block(x_nchw, conv_w, conv_b):
    """x_nchw: [B, Cin, H, W]; conv_w: [Cout, Cin, 1, 1]; conv_b: [Cout].
    Returns [B, Cout, H//2, W//2] (same as the PyTorch Transition_block)."""
    B, Cin, H, W = x_nchw.shape
    Cout = conv_w.shape[0]
    Ho, Wo = H // 2, W // 2
    if Ho == 0 or Wo == 0:
        return jnp.zeros((B, Cout, Ho, Wo), x_nchw.dtype)

    H2, W2 = 2 * Ho, 2 * Wo
    x = x_nchw
    if (H2, W2) != (H, W):
        # PyTorch AvgPool2d(2,2) silently drops a trailing odd row/column.
        x = x[:, :, :H2, :W2]

    TH = _choose_tile_h(Ho, Cin, Cout, W2, x.dtype.itemsize)
    Ho_pad = ((Ho + TH - 1) // TH) * TH
    if Ho_pad != Ho:
        x = jnp.pad(x, ((0, 0), (0, 0), (0, 2 * (Ho_pad - Ho)), (0, 0)))

    # ---- small resident constants (built once, stay in VMEM) ----
    w2 = conv_w.reshape(Cout, Cin).astype(jnp.float32)                  # [Cout, Cin]
    # height-pool matrix with the 0.25 average folded in: ph[th, h] = 0.25*[h//2==th]
    ph = 0.25 * jnp.repeat(jnp.eye(TH, dtype=jnp.float32), 2, axis=1)   # [TH, 2TH]
    wcomb = jnp.einsum("oc,ty->otcy", w2, ph).reshape(Cout * TH, Cin * 2 * TH)
    # width-pool matrix: pw[w, wo] = [w//2 == wo]
    pw = jnp.repeat(jnp.eye(Wo, dtype=jnp.float32), 2, axis=0)          # [W2, Wo]
    bcomb = jnp.repeat(conv_b.astype(jnp.float32), TH).reshape(Cout * TH, 1)

    grid = (B, Ho_pad // TH)
    out = pl.pallas_call(
        _transition_kernel,
        out_shape=jax.ShapeDtypeStruct((B, Cout, Ho_pad, Wo), x_nchw.dtype),
        grid=grid,
        in_specs=[
            pl.BlockSpec((1, Cin, 2 * TH, W2), lambda b, i: (b, 0, i, 0)),
            pl.BlockSpec((Cout * TH, Cin * 2 * TH), lambda b, i: (0, 0)),
            pl.BlockSpec((W2, Wo), lambda b, i: (0, 0)),
            pl.BlockSpec((Cout * TH, 1), lambda b, i: (0, 0)),
        ],
        out_specs=pl.BlockSpec((1, Cout, TH, Wo), lambda b, i: (b, 0, i, 0)),
        compiler_params=pltpu.CompilerParams(
            dimension_semantics=("parallel", "parallel")),
    )(x, wcomb, pw, bcomb)

    if Ho_pad != Ho:
        out = out[:, :, :Ho, :]
    return out


def _reference(x, conv_w, conv_b):
    """Plain-JAX reference matching the PyTorch module exactly."""
    lr = jnp.where(x > 0, x, 0.01 * x)
    w = conv_w.reshape(conv_w.shape[0], conv_w.shape[1])
    y = jnp.einsum("bchw,oc->bohw", lr, w) + conv_b[None, :, None, None]
    B, Cout, H, W = y.shape
    Ho, Wo = H // 2, W // 2
    y = y[:, :, :2 * Ho, :2 * Wo].reshape(B, Cout, Ho, 2, Wo, 2).mean(axis=(3, 5))
    return y


if __name__ == "__main__":
    key = jax.random.PRNGKey(0)
    k1, k2, k3 = jax.random.split(key, 3)

    B, Cin, H, W = 2, 16, 16, 16      # module defaults: in_ch=16
    Cout = 48                         # module defaults: out_ch=48

    x = jax.random.normal(k1, (B, Cin, H, W), dtype=jnp.float32)
    conv_w = jax.random.normal(k2, (Cout, Cin, 1, 1), dtype=jnp.float32) * 0.1
    conv_b = jax.random.normal(k3, (Cout,), dtype=jnp.float32) * 0.1

    out = jax.block_until_ready(transition_block(x, conv_w, conv_b))
    ref = _reference(x, conv_w, conv_b)
    assert out.shape == (B, Cout, H // 2, W // 2), out.shape
    assert jnp.allclose(out, ref, atol=1e-4, rtol=1e-4), "mismatch vs reference"

    # non-divisible row count (exercises zero-pad + slice path)
    x2 = jax.random.normal(k1, (1, Cin, 18, 20), dtype=jnp.float32)
    out2 = jax.block_until_ready(transition_block(x2, conv_w, conv_b))
    assert jnp.allclose(out2, _reference(x2, conv_w, conv_b), atol=1e-4, rtol=1e-4)

    # odd spatial size (exercises PyTorch-style trailing crop)
    x3 = jax.random.normal(k2, (1, Cin, 17, 15), dtype=jnp.float32)
    out3 = jax.block_until_ready(transition_block(x3, conv_w, conv_b))
    assert jnp.allclose(out3, _reference(x3, conv_w, conv_b), atol=1e-4, rtol=1e-4)

    print("KERNEL_OK")
</pallas_src>

<mosaic_0001>
module attributes {stable_mosaic.version = 11 : i64} {
  func.func @_transition_kernel(%arg0: i32, %arg1: i32, %arg2: memref<1x16x16x16xf32, #tpu.memory_space<vmem>>, %arg3: memref<384x256xf32, #tpu.memory_space<vmem>>, %arg4: memref<16x8xf32, #tpu.memory_space<vmem>>, %arg5: memref<384x1xf32, #tpu.memory_space<vmem>>, %arg6: memref<1x48x8x8xf32, #tpu.memory_space<vmem>>) attributes {dimension_semantics = [#tpu.dimension_semantics<parallel>, #tpu.dimension_semantics<parallel>], iteration_bounds = array<i64: 2, 1>, scalar_prefetch = 0 : i64, scratch_operands = 0 : i64, tpu.core_type = #tpu.core_type<tc>, window_params = [{transform_indices = @transform_0, window_bounds = array<i64: 1, 16, 16, 16>}, {pipeline_mode = #tpu.pipeline_mode<synchronous>, transform_indices = @transform_1, window_bounds = array<i64: 384, 256>}, {pipeline_mode = #tpu.pipeline_mode<synchronous>, transform_indices = @transform_2, window_bounds = array<i64: 16, 8>}, {pipeline_mode = #tpu.pipeline_mode<synchronous>, transform_indices = @transform_3, window_bounds = array<i64: 384, 1>}, {transform_indices = @transform_4, window_bounds = array<i64: 1, 48, 8, 8>}]} {
    %c0 = arith.constant 0 : index
    %c0_0 = arith.constant 0 : index
    %c0_1 = arith.constant 0 : index
    %c0_2 = arith.constant 0 : index
    %0 = vector.load %arg2[%c0, %c0_0, %c0_1, %c0_2] : memref<1x16x16x16xf32, #tpu.memory_space<vmem>>, vector<1x16x16x16xf32>
    %1 = vector.shape_cast %0 : vector<1x16x16x16xf32> to vector<16x16x16xf32>
    %2 = vector.shape_cast %1 : vector<16x16x16xf32> to vector<256x16xf32>
    %cst = arith.constant 0.000000e+00 : f32
    %3 = vector.broadcast %cst : f32 to vector<256x16xf32>
    %4 = arith.cmpf ogt, %2, %3 : vector<256x16xf32>
    %cst_3 = arith.constant 0.00999999977 : f32
    %5 = vector.broadcast %cst_3 : f32 to vector<256x16xf32>
    %6 = arith.mulf %5, %2 : vector<256x16xf32>
    %7 = arith.select %4, %2, %6 : vector<256x16xi1>, vector<256x16xf32>
    %c0_4 = arith.constant 0 : index
    %c0_5 = arith.constant 0 : index
    %8 = vector.load %arg4[%c0_4, %c0_5] : memref<16x8xf32, #tpu.memory_space<vmem>>, vector<16x8xf32>
    %cst_6 = arith.constant dense<0.000000e+00> : vector<256x8xf32>
    %9 = tpu.matmul %7, %8, %cst_6 {dimension_numbers = #tpu.dot_dimension_numbers<[1], [0], [0], [1], [0, 0, 1, 1], [], []>} : vector<256x16xf32>, vector<16x8xf32>, vector<256x8xf32> -> vector<256x8xf32>
    %c0_7 = arith.constant 0 : index
    %c0_8 = arith.constant 0 : index
    %10 = vector.load %arg3[%c0_7, %c0_8] : memref<384x256xf32, #tpu.memory_space<vmem>>, vector<384x256xf32>
    %cst_9 = arith.constant dense<0.000000e+00> : vector<384x8xf32>
    %11 = tpu.matmul %10, %9, %cst_9 {dimension_numbers = #tpu.dot_dimension_numbers<[1], [0], [0], [1], [0, 0, 1, 1], [], []>} : vector<384x256xf32>, vector<256x8xf32>, vector<384x8xf32> -> vector<384x8xf32>
    %c0_10 = arith.constant 0 : index
    %c0_11 = arith.constant 0 : index
    %12 = vector.load %arg5[%c0_10, %c0_11] : memref<384x1xf32, #tpu.memory_space<vmem>>, vector<384x1xf32>
    %13 = vector.broadcast %12 : vector<384x1xf32> to vector<384x8xf32>
    %14 = arith.addf %11, %13 : vector<384x8xf32>
    %15 = vector.shape_cast %14 : vector<384x8xf32> to vector<48x8x8xf32>
    %c0_12 = arith.constant 0 : index
    %c0_13 = arith.constant 0 : index
    %c0_14 = arith.constant 0 : index
    %c0_15 = arith.constant 0 : index
    %16 = vector.load %arg6[%c0_12, %c0_13, %c0_14, %c0_15] : memref<1x48x8x8xf32, #tpu.memory_space<vmem>>, vector<1x48x8x8xf32>
    %17 = vector.shape_cast %16 : vector<1x48x8x8xf32> to vector<48x8x8xf32>
    %18 = vector.shape_cast %15 : vector<48x8x8xf32> to vector<1x48x8x8xf32>
    tpu.vector_store %arg6[%c0_12, %c0_13, %c0_14, %c0_15], %18 {strides = array<i32>} : memref<1x48x8x8xf32, #tpu.memory_space<vmem>>, vector<1x48x8x8xf32>,
    return
  }
  func.func @transform_0(%arg0: i32, %arg1: i32) -> (i32, i32, i32, i32) {
    %c0_i32 = arith.constant 0 : i32
    %c0_i32_0 = arith.constant 0 : i32
    %c0_i32_1 = arith.constant 0 : i32
    return %arg0, %c0_i32, %arg1, %c0_i32_0 : i32, i32, i32, i32
  }
  func.func @transform_1(%arg0: i32, %arg1: i32) -> (i32, i32) {
    %c0_i32 = arith.constant 0 : i32
    %c0_i32_0 = arith.constant 0 : i32
    %c0_i32_1 = arith.constant 0 : i32
    return %c0_i32, %c0_i32_0 : i32, i32
  }
  func.func @transform_2(%arg0: i32, %arg1: i32) -> (i32, i32) {
    %c0_i32 = arith.constant 0 : i32
    %c0_i32_0 = arith.constant 0 : i32
    %c0_i32_1 = arith.constant 0 : i32
    return %c0_i32, %c0_i32_0 : i32, i32
  }
  func.func @transform_3(%arg0: i32, %arg1: i32) -> (i32, i32) {
    %c0_i32 = arith.constant 0 : i32
    %c0_i32_0 = arith.constant 0 : i32
    %c0_i32_1 = arith.constant 0 : i32
    return %c0_i32, %c0_i32_0 : i32, i32
  }
  func.func @transform_4(%arg0: i32, %arg1: i32) -> (i32, i32, i32, i32) {
    %c0_i32 = arith.constant 0 : i32
    %c0_i32_0 = arith.constant 0 : i32
    %c0_i32_1 = arith.constant 0 : i32
    return %arg0, %c0_i32, %arg1, %c0_i32_0 : i32, i32, i32, i32
  }
}

</mosaic_0001>

<bundles_post_ra>
// kernel: tpu_custom_call.1
= control target key start
LH: loop header
LB: loop body
LE: loop exit
PB: predicated region body
PF: predicated region fallthrough
CT: control target
= control target key end

     0   :  { %9 = vsyncpa [#allocation3], 0  ;;  %s2585_s0 = inlined_call_operand.hbm [shape: f32[2,16,16,16], index: 0, kind: input, shape index: {}]   ;;  %s2586_s1 = inlined_call_operand.hbm [shape: f32[384,256], index: 1, kind: input, shape index: {}]   ;;  %s2587_s2 = inlined_call_operand.vmem [shape: f32[16,8], index: 2, kind: input, shape index: {}]   ;;  %s2588_s3 = inlined_call_operand.vmem [shape: f32[384,1], index: 3, kind: input, shape index: {}]   ;;  %s2589_s4 = inlined_call_operand.vmem [shape: f32[2,48,8,8], index: 4, kind: output, shape index: {}]  }
   0x1   :  { %11 = vsyncpa [#allocation3 + $0x1], 0 }
   0x2   :  { %12 = vsyncpa [#allocation5], 0  ;;  %s1965_s15 = smov 0   ;;  %s1967_s16 = smov 0  }
   0x3   :  { %s1969_s17 = smov 0   ;;  %s1971_s18 = smov 0  }
   0x4   :  { %s1973_s19 = smov 0   ;;  %s1975_s20 = smov 0  }
   0x5 LB: > { %s1550_s21 = sadd.s32 4294967295, %s1930_s20   ;;  %p52_p0 = scmp.ne.s32.totalorder %s1914_s16, %s1910_s15  ;;  %s1930_s20 = sphi %s1975_s20, %s18_s20   ;;  %s1926_s19 = sphi %s1973_s19, %s2599_s19   ;;  %s1922_s18 = sphi %s1971_s18, %s2598_s18   ;;  %s1918_s17 = sphi %s1969_s17, %s2597_s17   ;;  %s1914_s16 = sphi %s1967_s16, %s2596_s16   ;;  %s1910_s15 = sphi %s1965_s15, %s2595_s15  }
   0x6   : > { %p1995_p1 = scmp.eq.s32.totalorder %s1550_s21, 0  ;;  %p1552_p2 = scmp.ge.s32.totalorder %s1930_s20, 1 }
   0x7   : > { %p154_p3 = scmp.lt.s32.totalorder %s1930_s20, 3  ;;  %s1932_s25 = smov [#allocation4]  }
   0x8   : > { %p2003_p4 = por %p1995_p1, %p52_p0  ;;  %s166_s26 = sshll.u32 %s1932_s25, 4  ;;  %s167_s26 = int_to_ptr.vmem [resolvable:$true] %s166_s26 }
   0x9   : > { %p2007_p5 = pnand %p1552_p2, %p154_p3  ;;  %s30_s28 = sadd.s32 1, %s1926_s19 }
   0xa   : > { %s1833_s29 = scalar_lea.vmem %s167_s26, 12288  ;;  %p1841_p12 = scmp.lt.s32.totalorder %s167_s26, %s167_s26 }
   0xb   : > { %p1754_p6 = pneg %p2007_p5  ;;  %p1834_p9 = scmp.ne.s32.totalorder %s167_s26, %s1833_s29 }
   0xc   : > { %p1842_p13 = scmp.lt.s32.totalorder %s1833_s29, %s1833_s29 }
   0xd   : > { %p2015_p7 = pnand %p1754_p6, %p1995_p1 }
   0xe   : > { %p1843_p0 = por %p1842_p13, %p1841_p12 }
   0xf   : > { %p1824_p8 = pneg %p2015_p7 }
  0x11   : > { %p1836_p10 = pnand %p1834_p9, %p1824_p8 }
  0x13   : > { %p1837_p11 = pneg %p1836_p10 }
  0x15   : > { %p1844_p2 = pnand %p1843_p0, %p1837_p11 }
  0x17   : > { %1847 = shalt.err (!%p1844_p2)
}
  0x18   : > { %s1933_s30 = smov 256   ;;  %s1934_s5 = smov 16  }
  0x19   : > { %1757 = dma.hbm_to_vmem [thread:$0]  (!%p2015_p7), %s2586_s1, 12288, %s167_s26, [#allocation5], %s1933_s30, %s1933_s30, %s1934_s5  }
  0x1a   : > { %p32_p3 = scmp.ge.s32.totalorder %s30_s28, 2  ;;  %s39_s8 = sadd.s32 1, %s1918_s17 }
  0x1b   : > { %p46_p6 = scmp.ne.s32.totalorder %s1918_s17, %s1914_s16  ;;  %p47_p8 = scmp.eq.s32.totalorder %s1930_s20, 0 }
  0x1c   : > { %s2601_s28 = smov (%p32_p3, %s30_s28), 0  ;;  %p1763_p10 = scmp.lt.s32.totalorder %s1930_s20, 2 }
  0x1d   : > { %p48_p9 = por %p47_p8, %p46_p6  ;;  %s34_s9 = ssub.s32 %s1926_s19, %s2601_s28 }
  0x1e   : > { %s186_s10 = sand.u32 1, %s1918_s17   ;;  %p37_p11 = scmp.eq.s32.totalorder %s34_s9, 0 }
  0x1f   : > { %s1555_s11 = sshll.u32 %s186_s10, 8  ;;  %s1596_s12 = sshll.u32 %s1926_s19, 12 }
  0x20   : > { %s2039_s13 = scalar_select %p37_p11, %s1918_s17, %s39_s8  }
  0x21   : > { %s198_s21 = scalar_lea.hbm %s2585_s0, %s1596_s12  ;;  %s190_s25 = scalar_lea.vmem [#allocation2], %s1555_s11 }
  0x22   : > { %s199_s26 = sshll.u32 %s190_s25, 4  ;;  %p2044_p7 = pnand %p1763_p10, %p48_p9  ;;  %s200_s26 = int_to_ptr.vmem [resolvable:$true] %s199_s26 }
  0x23   : > { %s187_s29 = scalar_lea.sflag [#allocation3], %s186_s10  ;;  %s1861_s30 = scalar_lea.vmem %s200_s26, 4096 }
  0x24   : > { %p1850_p12 = pneg %p2044_p7  ;;  %p1862_p13 = scmp.ne.s32.totalorder %s200_s26, %s1861_s30 }
  0x25   : > { %s1935_s5 = smov [#allocation2]  }
  0x26   : > { %p1864_p0 = pnand %p1862_p13, %p1850_p12  ;;  %s1866_s6 = sshll.u32 %s1935_s5, 4  ;;  %s1867_s6 = int_to_ptr.vmem [resolvable:$false] %s1866_s6 }
  0x27   : > { %s1868_s7 = scalar_lea.vmem %s1867_s6, 8192  ;;  %p1869_p3 = scmp.lt.s32.totalorder %s200_s26, %s1867_s6 }
  0x28   : > { %p1865_p2 = pneg %p1864_p0  ;;  %p1870_p6 = scmp.lt.s32.totalorder %s1868_s7, %s1861_s30 }
  0x2a   : > { %p1871_p8 = por %p1870_p6, %p1869_p3 }
  0x2c   : > { %p1872_p9 = pnand %p1871_p8, %p1865_p2 }
  0x2e   : > { %1875 = shalt.err (!%p1872_p9)
}
  0x2f   : > { %s1936_s8 = smov 128   ;;  %s1937_s9 = smov 8  }
  0x30   : > { %1761 = dma.hbm_to_vmem [thread:$0]  (!%p2044_p7), %s198_s21, 4096, %s200_s26, %s187_s29, %s1936_s8, %s1936_s8, %s1937_s9  }
  0x31   : > { %211 = sbr.rel (%p2007_p5) target bundleno = 639 (0x27f), region = 36  ;;  %s213_s10 = sand.u32 (!%p2007_p5), 1, %s1914_s16  }
  0x32   : > { %s1559_s11 = sshll.u32 (!%p2007_p5), %s213_s10, 8  ;;  %s214_s12 = scalar_lea.sflag (!%p2007_p5), [#allocation3], %s213_s10 }
  0x33   : > { %s2055_s14 = scalar_lea.vmem (!%p2007_p5), [#allocation2], %s1559_s11 }
  0x36   : > { %1901 = dma.done.wait (%p2003_p4), %s214_s12, 4096  }
  0x37   : > { %1903 = vsyncadd (%p2003_p4), %s214_s12, 4294963200 }
  0x38   : > { %1905 = dma.done.wait (%p1995_p1), [#allocation5], 12288  }
  0x39   : > { %1907 = vsyncadd (%p1995_p1), [#allocation5], 4294955008  ;;  %v387_v0 = vld [vmem:[%s2587_s2 + $0x8] sm:$0xff]  ;;  %v386_v1 = vld [vmem:[%s2587_s2] sm:$0xff]  ;;  %vm388_vm0 = vcmask 130048   ;;  %p250_p1 = scmp.lt.s32.totalorder %s1922_s18, 1 }
  0x3a   : > { %v258_v2 = vld [vmem:[%s2055_s14] sm:$0xff]  ;;  %1631 = vmatprep.subr.mxu0 %v387_v0  ;;  %v259_v4 = vld [vmem:[%s2055_s14 + $0x8] sm:$0xff]  ;;  %v260_v5 = vld [vmem:[%s2055_s14 + $0x10] sm:$0xff] }
  0x3b   : > { %vm290_vm1 = vcmp.gt.f32.partialorder %v258_v2, 0.0  ;;  %v322_v3 = vmul.f32 0.01, %v258_v2  ;;  %v261_v6 = vld [vmem:[%s2055_s14 + $0x18] sm:$0xff]  ;;  %1632 = vmatpush3.msra.mxu0 %v387_v0  ;;  %vm291_vm2 = vcmp.gt.f32.partialorder %v259_v4, 0.0  ;;  %vm292_vm3 = vcmp.gt.f32.partialorder %v260_v5, 0.0 }
  0x3c   : > { %v323_v7 = vmul.f32 0.01, %v259_v4  ;;  %v324_v8 = vmul.f32 0.01, %v260_v5  ;;  %1633 = vmatprep.subr.mxu0 %v386_v1  ;;  %vm293_vm4 = vcmp.gt.f32.partialorder %v261_v6, 0.0  ;;  %v262_v11 = vld [vmem:[%s2055_s14 + $0x20] sm:$0xff] }
  0x3d   : > { %v354_v9 = vsel %vm290_vm1, %v258_v2, %v322_v3  ;;  %v325_v10 = vmul.f32 0.01, %v261_v6  ;;  %v263_v12 = vld [vmem:[%s2055_s14 + $0x28] sm:$0xff]  ;;  %1634 = vmatpush3.msra.mxu0 %v386_v1  ;;  %vm294_vm5 = vcmp.gt.f32.partialorder %v262_v11, 0.0  ;;  %v326_v15 = vmul.f32 0.01, %v262_v11 }
  0x3e   : > { %1635 = vmatprep.mubr.msk.f32.mxu0 %vm388_vm0, %v354_v9  ;;  %v355_v13 = vsel %vm291_vm2, %v259_v4, %v323_v7  ;;  %v356_v14 = vsel %vm292_vm3, %v260_v5, %v324_v8  ;;  %v264_v16 = vld [vmem:[%s2055_s14 + $0x30] sm:$0xff]  ;;  %v327_v18 = vmul.f32 0.01, %v263_v12  ;;  %vm295_vm6 = vcmp.gt.f32.partialorder %v263_v12, 0.0  ;;  %v265_v21 = vld [vmem:[%s2055_s14 + $0x38] sm:$0xff]  ;;  %v266_v22 = vld [vmem:[%s2055_s14 + $0x40] sm:$0xff] }
  0x3f   : > { %1636 = vmatmul.mubr.msk.f32.vlgmr.msra.gmra.mxu0 %vm388_vm0, %v355_v13  ;;  %v357_v17 = vsel %vm293_vm4, %v261_v6, %v325_v10  ;;  %v358_v19 = vsel %vm294_vm5, %v262_v11, %v326_v15  ;;  %v328_v20 = vmul.f32 0.01, %v264_v16  ;;  %vm296_vm7 = vcmp.gt.f32.partialorder %v264_v16, 0.0  ;;  %v267_v27 = vld [vmem:[%s2055_s14 + $0x48] sm:$0xff]  ;;  %v268_v28 = vld [vmem:[%s2055_s14 + $0x50] sm:$0xff]  ;;  %v269_v33 = vld [vmem:[%s2055_s14 + $0x58] sm:$0xff] }
  0x40   : > { %1638 = vmatprep.mubr.msk.f32.mxu0 %vm388_vm0, %v356_v14  ;;  %v359_v23 = vsel %vm295_vm6, %v263_v12, %v327_v18  ;;  %v329_v24 = vmul.f32 0.01, %v265_v21  ;;  %vm297_vm8 = vcmp.gt.f32.partialorder %v265_v21, 0.0  ;;  %v330_v26 = vmul.f32 0.01, %v266_v22  ;;  %v270_v34 = vld [vmem:[%s2055_s14 + $0x60] sm:$0xff] }
  0x41   : > { %v360_v25 = vsel %vm296_vm7, %v264_v16, %v328_v20  ;;  %vm298_vm9 = vcmp.gt.f32.partialorder %v266_v22, 0.0  ;;  %v331_v30 = vmul.f32 0.01, %v267_v27  ;;  %vm299_vm10 = vcmp.gt.f32.partialorder %v267_v27, 0.0  ;;  %v271_v39 = vld [vmem:[%s2055_s14 + $0x68] sm:$0xff]  ;;  %v272_v40 = vld [vmem:[%s2055_s14 + $0x70] sm:$0xff] }
  0x42   : > { %v361_v29 = vsel %vm297_vm8, %v265_v21, %v329_v24  ;;  %v362_v31 = vsel %vm298_vm9, %v266_v22, %v330_v26  ;;  %v332_v32 = vmul.f32 0.01, %v268_v28  ;;  %vm300_vm11 = vcmp.gt.f32.partialorder %v268_v28, 0.0  ;;  %v273_v45 = vld [vmem:[%s2055_s14 + $0x78] sm:$0xff]  ;;  %v274_v46 = vld [vmem:[%s2055_s14 + $0x80] sm:$0xff]  ;;  %v275_v51 = vld [vmem:[%s2055_s14 + $0x88] sm:$0xff] }
  0x43   : > { %1639 = vmatmul.mubr.msk.f32.gmra.mxu0 %vm388_vm0, %v357_v17  ;;  %v363_v35 = vsel %vm299_vm10, %v267_v27, %v331_v30  ;;  %v333_v36 = vmul.f32 0.01, %v269_v33  ;;  %vm301_vm12 = vcmp.gt.f32.partialorder %v269_v33, 0.0  ;;  %v334_v38 = vmul.f32 0.01, %v270_v34  ;;  %v276_v52 = vld [vmem:[%s2055_s14 + $0x90] sm:$0xff] }
  0x44   : > { %1641 = vmatprep.mubr.msk.f32.mxu0 %vm388_vm0, %v358_v19  ;;  %v364_v37 = vsel %vm300_vm11, %v268_v28, %v332_v32  ;;  %vm302_vm13 = vcmp.gt.f32.partialorder %v270_v34, 0.0  ;;  %v335_v42 = vmul.f32 0.01, %v271_v39  ;;  %vm303_vm14 = vcmp.gt.f32.partialorder %v271_v39, 0.0  ;;  %v277_v57 = vld [vmem:[%s2055_s14 + $0x98] sm:$0xff]  ;;  %v278_v58 = vld [vmem:[%s2055_s14 + $0xa0] sm:$0xff] }
  0x45   : > { %v365_v41 = vsel %vm301_vm12, %v269_v33, %v333_v36  ;;  %v366_v43 = vsel %vm302_vm13, %v270_v34, %v334_v38  ;;  %v336_v44 = vmul.f32 0.01, %v272_v40  ;;  %vm304_vm15 = vcmp.gt.f32.partialorder %v272_v40, 0.0  ;;  %v279_v63 = vld [vmem:[%s2055_s14 + $0xa8] sm:$0xff]  ;;  %v280_v0 = vld [vmem:[%s2055_s14 + $0xb0] sm:$0xff]  ;;  %v281_v5 = vld [vmem:[%s2055_s14 + $0xb8] sm:$0xff] }
  0x46   : > { %v367_v47 = vsel %vm303_vm14, %v271_v39, %v335_v42  ;;  %v337_v48 = vmul.f32 0.01, %v273_v45  ;;  %vm305_vm1 = vcmp.gt.f32.partialorder %v273_v45, 0.0  ;;  %v338_v50 = vmul.f32 0.01, %v274_v46  ;;  %v282_v6 = vld [vmem:[%s2055_s14 + $0xc0] sm:$0xff] }
  0x47   : > { %1642 = vmatmul.mubr.msk.f32.gmra.mxu0 %vm388_vm0, %v359_v23  ;;  %v368_v49 = vsel %vm304_vm15, %v272_v40, %v336_v44  ;;  %vm306_vm2 = vcmp.gt.f32.partialorder %v274_v46, 0.0  ;;  %v339_v54 = vmul.f32 0.01, %v275_v51  ;;  %vm307_vm3 = vcmp.gt.f32.partialorder %v275_v51, 0.0  ;;  %v283_v11 = vld [vmem:[%s2055_s14 + $0xc8] sm:$0xff]  ;;  %v284_v12 = vld [vmem:[%s2055_s14 + $0xd0] sm:$0xff] }
  0x48   : > { %1644 = vmatprep.mubr.msk.f32.mxu0 %vm388_vm0, %v360_v25  ;;  %v369_v53 = vsel %vm305_vm1, %v273_v45, %v337_v48  ;;  %v370_v55 = vsel %vm306_vm2, %v274_v46, %v338_v50  ;;  %v340_v56 = vmul.f32 0.01, %v276_v52  ;;  %vm308_vm4 = vcmp.gt.f32.partialorder %v276_v52, 0.0  ;;  %v285_v17 = vld [vmem:[%s2055_s14 + $0xd8] sm:$0xff]  ;;  %v286_v18 = vld [vmem:[%s2055_s14 + $0xe0] sm:$0xff]  ;;  %v287_v23 = vld [vmem:[%s2055_s14 + $0xe8] sm:$0xff] }
  0x49   : > { %v371_v59 = vsel %vm307_vm3, %v275_v51, %v339_v54  ;;  %v341_v60 = vmul.f32 0.01, %v277_v57  ;;  %vm309_vm5 = vcmp.gt.f32.partialorder %v277_v57, 0.0  ;;  %v342_v62 = vmul.f32 0.01, %v278_v58  ;;  %v288_v24 = vld [vmem:[%s2055_s14 + $0xf0] sm:$0xff] }
  0x4a   : > { %v372_v61 = vsel %vm308_vm4, %v276_v52, %v340_v56  ;;  %vm310_vm6 = vcmp.gt.f32.partialorder %v278_v58, 0.0  ;;  %v343_v2 = vmul.f32 0.01, %v279_v63  ;;  %vm311_vm7 = vcmp.gt.f32.partialorder %v279_v63, 0.0  ;;  %v808_v36 = vld [vmem:[%s2588_s3 + $0x10] sm:$0xff]  ;;  %v809_v38 = vld [vmem:[%s2588_s3 + $0x18] sm:$0xff] }
  0x4b   : > { %1645 = vmatmul.mubr.msk.f32.gmra.mxu0 %vm388_vm0, %v361_v29  ;;  %v373_v1 = vsel %vm309_vm5, %v277_v57, %v341_v60  ;;  %v374_v3 = vsel %vm310_vm6, %v278_v58, %v342_v62  ;;  %v344_v4 = vmul.f32 0.01, %v280_v0  ;;  %vm312_vm8 = vcmp.gt.f32.partialorder %v280_v0, 0.0  ;;  %v289_v29 = vld [vmem:[%s2055_s14 + $0xf8] sm:$0xff]  ;;  %v807_v39 = vld [vmem:[%s2588_s3 + $0x8] sm:$0xff]  ;;  %v814_v45 = vld [vmem:[%s2588_s3 + $0x40] sm:$0xff] }
  0x4c   : > { %1647 = vmatprep.mubr.msk.f32.mxu0 %vm388_vm0, %v362_v31  ;;  %v375_v7 = vsel %vm311_vm7, %v279_v63, %v343_v2  ;;  %v345_v8 = vmul.f32 0.01, %v281_v5  ;;  %vm313_vm9 = vcmp.gt.f32.partialorder %v281_v5, 0.0  ;;  %v346_v10 = vmul.f32 0.01, %v282_v6  ;;  %v811_v40 = vld [vmem:[%s2588_s3 + $0x28] sm:$0xff] }
  0x4d   : > { %v376_v9 = vsel %vm312_vm8, %v280_v0, %v344_v4  ;;  %vm314_vm10 = vcmp.gt.f32.partialorder %v282_v6, 0.0  ;;  %v347_v14 = vmul.f32 0.01, %v283_v11  ;;  %vm315_vm11 = vcmp.gt.f32.partialorder %v283_v11, 0.0  ;;  %v813_v42 = vld [vmem:[%s2588_s3 + $0x38] sm:$0xff]  ;;  %v815_v44 = vld [vmem:[%s2588_s3 + $0x48] sm:$0xff] }
  0x4e   : > { %v377_v13 = vsel %vm313_vm9, %v281_v5, %v345_v8  ;;  %v378_v15 = vsel %vm314_vm10, %v282_v6, %v346_v10  ;;  %v348_v16 = vmul.f32 0.01, %v284_v12  ;;  %vm316_vm12 = vcmp.gt.f32.partialorder %v284_v12, 0.0  ;;  %v711_v46 = vld [vmem:[#allocation4 + $0x8] sm:$0xff]  ;;  %v817_v48 = vld [vmem:[%s2588_s3 + $0x58] sm:$0xff]  ;;  %v818_v51 = vld [vmem:[%s2588_s3 + $0x60] sm:$0xff] }
  0x4f   : > { %1648 = vmatmul.mubr.msk.f32.gmra.mxu0 %vm388_vm0, %v363_v35  ;;  %v379_v19 = vsel %vm315_vm11, %v283_v11, %v347_v14  ;;  %v349_v20 = vmul.f32 0.01, %v285_v17  ;;  %vm317_vm13 = vcmp.gt.f32.partialorder %v285_v17, 0.0  ;;  %v350_v22 = vmul.f32 0.01, %v286_v18  ;;  %v819_v50 = vld [vmem:[%s2588_s3 + $0x68] sm:$0xff] }
  0x50   : > { %1650 = vmatprep.mubr.msk.f32.mxu0 %vm388_vm0, %v364_v37  ;;  %v380_v21 = vsel %vm316_vm12, %v284_v12, %v348_v16  ;;  %vm318_vm14 = vcmp.gt.f32.partialorder %v286_v18, 0.0  ;;  %v351_v26 = vmul.f32 0.01, %v287_v23  ;;  %vm319_vm15 = vcmp.gt.f32.partialorder %v287_v23, 0.0  ;;  %v806_v37 = vld [vmem:[%s2588_s3] sm:$0xff]  ;;  %v821_v52 = vld [vmem:[%s2588_s3 + $0x78] sm:$0xff] }
  0x51   : > { %v381_v25 = vsel %vm317_vm13, %v285_v17, %v349_v20  ;;  %v382_v27 = vsel %vm318_vm14, %v286_v18, %v350_v22  ;;  %v352_v28 = vmul.f32 0.01, %v288_v24  ;;  %vm320_vm1 = vcmp.gt.f32.partialorder %v288_v24, 0.0  ;;  %v823_v54 = vld [vmem:[%s2588_s3 + $0x88] sm:$0xff]  ;;  %v825_v56 = vld [vmem:[%s2588_s3 + $0x98] sm:$0xff]  ;;  %v824_v57 = vld [vmem:[%s2588_s3 + $0x90] sm:$0xff] }
  0x52   : > { %v383_v30 = vsel %vm319_vm15, %v287_v23, %v351_v26  ;;  %v353_v31 = vmul.f32 0.01, %v289_v29  ;;  %vm321_vm2 = vcmp.gt.f32.partialorder %v289_v29, 0.0  ;;  %v1938_v34 = vmov 0.0   ;;  %v827_v58 = vld [vmem:[%s2588_s3 + $0xa8] sm:$0xff]  ;;  %v829_v60 = vld [vmem:[%s2588_s3 + $0xb8] sm:$0xff] }
  0x53   : > { %1651 = vmatmul.mubr.msk.f32.gmra.mxu0 %vm388_vm0, %v365_v41  ;;  %v384_v32 = vsel %vm320_vm1, %v288_v24, %v352_v28  ;;  %1094 = vmatprep.subr.mxu0 %v1938_v34  ;;  %v1939_v35 = vmov 0   ;;  %v810_v41 = vld [vmem:[%s2588_s3 + $0x20] sm:$0xff]  ;;  %v831_v62 = vld [vmem:[%s2588_s3 + $0xc8] sm:$0xff]  ;;  %v833_v0 = vld [vmem:[%s2588_s3 + $0xd8] sm:$0xff]  ;;  %s2603_s18 = smov (!%p250_p1, %s1922_s18), 1 }
  0x54   : > { %1653 = vmatprep.mubr.msk.f32.mxu0 %vm388_vm0, %v366_v43  ;;  %v385_v33 = vsel %vm321_vm2, %v289_v29, %v353_v31  ;;  %1683 = vmatprep.subr.mxu1 %v1938_v34  ;;  %v812_v43 = vld [vmem:[%s2588_s3 + $0x30] sm:$0xff]  ;;  %v830_v63 = vld [vmem:[%s2588_s3 + $0xc0] sm:$0xff]  ;;  %v839_v11 = vld [vmem:[%s2588_s3 + $0x108] sm:$0xff]  ;;  %s1747_s23 = smul.u32 384, %s2603_s18 }
  0x55   : > { %1821 = vset.pattern.permute.xlu1 %v1939_v35  ;;  %1820 = vset.pattern.permute.xlu0 %v1939_v35  ;;  %v834_v4 = vld [vmem:[%s2588_s3 + $0xe0] sm:$0xff]  ;;  %v836_v8 = vld [vmem:[%s2588_s3 + $0xf0] sm:$0xff]  ;;  %v845_v23 = vld [vmem:[%s2588_s3 + $0x138] sm:$0xff] }
  0x56   : > { %866 = vperm.xlu1 %1821, %v808_v36   ;;  %856 = vperm.xlu0 %1820, %v806_v37   ;;  %v838_v12 = vld [vmem:[%s2588_s3 + $0x100] sm:$0xff]  ;;  %v840_v16 = vld [vmem:[%s2588_s3 + $0x110] sm:$0xff]  ;;  %s2450_s29 = scalar_lea.vmem %s2589_s4, %s1747_s23 }
  0x57   : > { %1654 = vmatmul.mubr.msk.f32.gmra.mxu0 %vm388_vm0, %v367_v47  ;;  %v757_v47 = vld [vmem:[#allocation4 + $0x178] sm:$0xff]  ;;  %v842_v20 = vld [vmem:[%s2588_s3 + $0x120] sm:$0xff]  ;;  %v844_v24 = vld [vmem:[%s2588_s3 + $0x130] sm:$0xff] }
  0x58   : > { %1656 = vmatprep.mubr.msk.f32.mxu0 %vm388_vm0, %v368_v49  ;;  %1273 = vmatprep.mubr.f32.mxu1 %v757_v47  ;;  %v816_v49 = vld [vmem:[%s2588_s3 + $0x50] sm:$0xff]  ;;  %v846_v28 = vld [vmem:[%s2588_s3 + $0x140] sm:$0xff] }
  0x5a   : > { %871 = vperm.xlu1 %1821, %v809_v38   ;;  %861 = vperm.xlu0 %1820, %v807_v39  }
  0x5b   : > { %1657 = vmatmul.mubr.msk.f32.gmra.mxu0 %vm388_vm0, %v369_v53  ;;  %v820_v53 = vld [vmem:[%s2588_s3 + $0x70] sm:$0xff] }
  0x5c   : > { %1659 = vmatprep.mubr.msk.f32.mxu0 %vm388_vm0, %v370_v55  ;;  %v822_v55 = vld [vmem:[%s2588_s3 + $0x80] sm:$0xff] }
  0x5e   : > { %881 = vperm.xlu1 %1821, %v811_v40   ;;  %876 = vperm.xlu0 %1820, %v810_v41  }
  0x5f   : > { %1660 = vmatmul.mubr.msk.f32.gmra.mxu0 %vm388_vm0, %v371_v59  ;;  %v826_v59 = vld [vmem:[%s2588_s3 + $0xa0] sm:$0xff] }
  0x60   : > { %1662 = vmatprep.mubr.msk.f32.mxu0 %vm388_vm0, %v372_v61  ;;  %v828_v61 = vld [vmem:[%s2588_s3 + $0xb0] sm:$0xff] }
  0x62   : > { %891 = vperm.xlu1 %1821, %v813_v42   ;;  %886 = vperm.xlu0 %1820, %v812_v43  }
  0x63   : > { %1663 = vmatmul.mubr.msk.f32.gmra.mxu0 %vm388_vm0, %v373_v1  ;;  %v832_v1 = vld [vmem:[%s2588_s3 + $0xd0] sm:$0xff] }
  0x64   : > { %1665 = vmatprep.mubr.msk.f32.mxu0 %vm388_vm0, %v374_v3  ;;  %v835_v3 = vld [vmem:[%s2588_s3 + $0xe8] sm:$0xff] }
  0x66   : > { %901 = vperm.xlu1 %1821, %v815_v44   ;;  %896 = vperm.xlu0 %1820, %v814_v45  }
  0x67   : > { %1666 = vmatmul.mubr.msk.f32.gmra.mxu0 %vm388_vm0, %v375_v7  ;;  %v837_v7 = vld [vmem:[%s2588_s3 + $0xf8] sm:$0xff] }
  0x68   : > { %1668 = vmatprep.mubr.msk.f32.mxu0 %vm388_vm0, %v376_v9 }
  0x6a   : > { %911 = vperm.xlu1 %1821, %v817_v48   ;;  %906 = vperm.xlu0 %1820, %v816_v49   ;;  %v710_v49 = vld [vmem:[#allocation4] sm:$0xff] }
  0x6b   : > { %1669 = vmatmul.mubr.msk.f32.gmra.mxu0 %vm388_vm0, %v377_v13 }
  0x6c   : > { %1671 = vmatprep.mubr.msk.f32.mxu0 %vm388_vm0, %v378_v15  ;;  %v841_v15 = vld [vmem:[%s2588_s3 + $0x118] sm:$0xff] }
  0x6e   : > { %921 = vperm.xlu1 %1821, %v819_v50   ;;  %916 = vperm.xlu0 %1820, %v818_v51   ;;  %v756_v50 = vld [vmem:[#allocation4 + $0x170] sm:$0xff]  ;;  %v713_v51 = vld [vmem:[#allocation4 + $0x18] sm:$0xff] }
  0x6f   : > { %1672 = vmatmul.mubr.msk.f32.gmra.mxu0 %vm388_vm0, %v379_v19  ;;  %v843_v19 = vld [vmem:[%s2588_s3 + $0x128] sm:$0xff] }
  0x70   : > { %1674 = vmatprep.mubr.msk.f32.mxu0 %vm388_vm0, %v380_v21 }
  0x72   : > { %931 = vperm.xlu1 %1821, %v821_v52   ;;  %926 = vperm.xlu0 %1820, %v820_v53   ;;  %v759_v52 = vld [vmem:[#allocation4 + $0x188] sm:$0xff]  ;;  %v849_v53 = vld [vmem:[%s2588_s3 + $0x158] sm:$0xff] }
  0x73   : > { %1675 = vmatmul.mubr.msk.f32.gmra.mxu0 %vm388_vm0, %v381_v25 }
  0x74   : > { %1677 = vmatprep.mubr.msk.f32.mxu0 %vm388_vm0, %v382_v27  ;;  %v847_v27 = vld [vmem:[%s2588_s3 + $0x148] sm:$0xff] }
  0x76   : > { %941 = vperm.xlu1 %1821, %v823_v54   ;;  %936 = vperm.xlu0 %1820, %v822_v55   ;;  %v848_v54 = vld [vmem:[%s2588_s3 + $0x150] sm:$0xff] }
  0x77   : > { %1678 = vmatmul.mubr.msk.f32.gmra.mxu0 %vm388_vm0, %v383_v30  ;;  %v712_v55 = vld [vmem:[#allocation4 + $0x10] sm:$0xff] }
  0x78   : > { %1680 = vmatprep.mubr.msk.f32.mxu0 %vm388_vm0, %v384_v32 }
  0x7a   : > { %951 = vperm.xlu1 %1821, %v825_v56   ;;  %946 = vperm.xlu0 %1820, %v824_v57   ;;  %v715_v56 = vld [vmem:[#allocation4 + $0x28] sm:$0xff]  ;;  %v761_v57 = vld [vmem:[#allocation4 + $0x198] sm:$0xff] }
  0x7b   : > { %1681 = vmatmul.mubr.msk.f32.gmra.mxu0 %vm388_vm0, %v385_v33  ;;  %vm1399_vm0 = vcmask 64512  }
  0x7c   : > { %1158 = vmatprep.mubr.f32.mxu0 %v711_v46 }
  0x7e   : > { %961 = vperm.xlu1 %1821, %v827_v58   ;;  %956 = vperm.xlu0 %1820, %v826_v59   ;;  %v851_v58 = vld [vmem:[%s2588_s3 + $0x168] sm:$0xff]  ;;  %v850_v59 = vld [vmem:[%s2588_s3 + $0x160] sm:$0xff] }
  0x82   : > { %971 = vperm.xlu1 %1821, %v829_v60   ;;  %966 = vperm.xlu0 %1820, %v828_v61   ;;  %v714_v60 = vld [vmem:[#allocation4 + $0x20] sm:$0xff]  ;;  %v760_v61 = vld [vmem:[#allocation4 + $0x190] sm:$0xff] }
  0x86   : > { %981 = vperm.xlu1 %1821, %v831_v62   ;;  %976 = vperm.xlu0 %1820, %v830_v63   ;;  %v717_v62 = vld [vmem:[#allocation4 + $0x38] sm:$0xff]  ;;  %v763_v63 = vld [vmem:[#allocation4 + $0x1a8] sm:$0xff] }
  0x8a   : > { %991 = vperm.xlu1 %1821, %v833_v0   ;;  %986 = vperm.xlu0 %1820, %v832_v1   ;;  %v853_v0 = vld [vmem:[%s2588_s3 + $0x178] sm:$0xff]  ;;  %v852_v1 = vld [vmem:[%s2588_s3 + $0x170] sm:$0xff] }
  0x8e   : > { %1001 = vperm.xlu1 %1821, %v835_v3   ;;  %996 = vperm.xlu0 %1820, %v834_v4   ;;  %v762_v3 = vld [vmem:[#allocation4 + $0x1a0] sm:$0xff]  ;;  %v719_v4 = vld [vmem:[#allocation4 + $0x48] sm:$0xff] }
  0x92   : > { %1011 = vperm.xlu1 %1821, %v837_v7   ;;  %1006 = vperm.xlu0 %1820, %v836_v8   ;;  %v764_v7 = vld [vmem:[#allocation4 + $0x1b0] sm:$0xff]  ;;  %v721_v8 = vld [vmem:[#allocation4 + $0x58] sm:$0xff] }
  0x96   : > { %1021 = vperm.xlu1 %1821, %v839_v11   ;;  %1016 = vperm.xlu0 %1820, %v838_v12   ;;  %v766_v11 = vld [vmem:[#allocation4 + $0x1c0] sm:$0xff]  ;;  %v723_v12 = vld [vmem:[#allocation4 + $0x68] sm:$0xff] }
  0x9a   : > { %1031 = vperm.xlu1 %1821, %v841_v15   ;;  %1026 = vperm.xlu0 %1820, %v840_v16   ;;  %v768_v15 = vld [vmem:[#allocation4 + $0x1d0] sm:$0xff]  ;;  %v725_v16 = vld [vmem:[#allocation4 + $0x78] sm:$0xff] }
  0x9e   : > { %1041 = vperm.xlu1 %1821, %v843_v19   ;;  %1036 = vperm.xlu0 %1820, %v842_v20   ;;  %v770_v19 = vld [vmem:[#allocation4 + $0x1e0] sm:$0xff]  ;;  %v727_v20 = vld [vmem:[#allocation4 + $0x88] sm:$0xff] }
  0xa2   : > { %1051 = vperm.xlu1 %1821, %v845_v23   ;;  %1046 = vperm.xlu0 %1820, %v844_v24   ;;  %v772_v23 = vld [vmem:[#allocation4 + $0x1f0] sm:$0xff]  ;;  %v729_v24 = vld [vmem:[#allocation4 + $0x98] sm:$0xff] }
  0xa6   : > { %1061 = vperm.xlu1 %1821, %v847_v27   ;;  %1056 = vperm.xlu0 %1820, %v846_v28   ;;  %v774_v27 = vld [vmem:[#allocation4 + $0x200] sm:$0xff]  ;;  %v731_v28 = vld [vmem:[#allocation4 + $0xa8] sm:$0xff] }
  0xaa   : > { %1071 = vperm.xlu1 %1821, %v849_v53   ;;  %1066 = vperm.xlu0 %1820, %v848_v54   ;;  %v743_v53 = vld [vmem:[#allocation4 + $0x108] sm:$0xff]  ;;  %v789_v54 = vld [vmem:[#allocation4 + $0x278] sm:$0xff] }
  0xae   : > { %1081 = vperm.xlu1 %1821, %v851_v58   ;;  %1076 = vperm.xlu0 %1820, %v850_v59   ;;  %v744_v58 = vld [vmem:[#allocation4 + $0x110] sm:$0xff]  ;;  %v790_v59 = vld [vmem:[#allocation4 + $0x280] sm:$0xff] }
  0xb2   : > { %1091 = vperm.xlu1 %1821, %v853_v0   ;;  %1086 = vperm.xlu0 %1820, %v852_v1   ;;  %v749_v0 = vld [vmem:[#allocation4 + $0x138] sm:$0xff]  ;;  %v795_v1 = vld [vmem:[#allocation4 + $0x2a8] sm:$0xff] }
  0xff   : > { %v2221_v2 = vpop.f32.mrf.mxu0 }
 0x101   : > { %v2229_v5 = vpop.f32.mrf.mxu0 }
 0x103   : > { %v2231_v6 = vpop.f32.mrf.mxu0 }
 0x105   : > { %v2239_v9 = vpop.f32.mrf.mxu0 }
 0x107   : > { %v2241_v10 = vpop.f32.mrf.mxu0 }
 0x109   : > { %v2249_v13 = vpop.f32.mrf.mxu0 }
 0x10b   : > { %v2251_v14 = vpop.f32.mrf.mxu0 }
 0x10d   : > { %v2259_v17 = vpop.f32.mrf.mxu0 }
 0x10f   : > { %v1649_v18 = vpop.f32.mrf.mxu0 }
 0x111   : > { %v591_v21 = vpop.f32.mrf.mxu0 }
 0x113   : > { %v1652_v22 = vpop.f32.mrf.mxu0 }
 0x115   : > { %v601_v25 = vpop.f32.mrf.mxu0 }
 0x117   : > { %v1655_v26 = vpop.f32.mrf.mxu0 }
 0x119   : > { %v611_v29 = vpop.f32.mrf.mxu0 }
 0x11b   : > { %v1658_v30 = vpop.f32.mrf.mxu0 }
 0x11c   : > { %1095 = vmatpush1.msra.mxu0 %v1658_v30  ;;  %1715 = vmatpush1.msra.mxu1 %v1658_v30  ;;  %v730_v30 = vld [vmem:[#allocation4 + $0xa0] sm:$0xff] }
 0x11d   : > { %v621_v31 = vpop.f32.mrf.mxu0  ;;  %1096 = vmatprep.subr.mxu0 %v1938_v34  ;;  %1684 = vmatprep.subr.mxu1 %v1938_v34 }
 0x11e   : > { %1097 = vmatpush1.msra.mxu0 %v621_v31  ;;  %1716 = vmatpush1.msra.mxu1 %v621_v31  ;;  %v776_v31 = vld [vmem:[#allocation4 + $0x210] sm:$0xff] }
 0x11f   : > { %v2281_v32 = vpop.f32.mrf.mxu0  ;;  %1098 = vmatprep.subr.mxu0 %v1938_v34  ;;  %1685 = vmatprep.subr.mxu1 %v1938_v34 }
 0x120   : > { %1099 = vmatpush1.msra.mxu0 %v1655_v26  ;;  %1717 = vmatpush1.msra.mxu1 %v1655_v26  ;;  %v728_v26 = vld [vmem:[#allocation4 + $0x90] sm:$0xff] }
 0x121   : > { %v2285_v33 = vpop.f32.mrf.mxu0  ;;  %1100 = vmatprep.subr.mxu0 %v1938_v34  ;;  %1686 = vmatprep.subr.mxu1 %v1938_v34 }
 0x122   : > { %1101 = vmatpush1.msra.mxu0 %v611_v29  ;;  %1718 = vmatpush1.msra.mxu1 %v611_v29  ;;  %v777_v29 = vld [vmem:[#allocation4 + $0x218] sm:$0xff] }
 0x123   : > { %v2289_v35 = vpop.f32.mrf.mxu0  ;;  %1102 = vmatprep.subr.mxu0 %v1938_v34  ;;  %1687 = vmatprep.subr.mxu1 %v1938_v34 }
 0x124   : > { %1103 = vmatpush1.msra.mxu0 %v1652_v22  ;;  %1719 = vmatpush1.msra.mxu1 %v1652_v22  ;;  %v726_v22 = vld [vmem:[#allocation4 + $0x80] sm:$0xff] }
 0x125   : > { %v2293_v36 = vpop.f32.mrf.mxu0  ;;  %1104 = vmatprep.subr.mxu0 %v1938_v34  ;;  %1688 = vmatprep.subr.mxu1 %v1938_v34 }
 0x126   : > { %1105 = vmatpush1.msra.mxu0 %v601_v25  ;;  %1720 = vmatpush1.msra.mxu1 %v601_v25  ;;  %v775_v25 = vld [vmem:[#allocation4 + $0x208] sm:$0xff] }
 0x127   : > { %v2297_v37 = vpop.f32.mrf.mxu0  ;;  %1106 = vmatprep.subr.mxu0 %v1938_v34  ;;  %1689 = vmatprep.subr.mxu1 %v1938_v34 }
 0x128   : > { %1107 = vmatpush1.msra.mxu0 %v1649_v18  ;;  %1721 = vmatpush1.msra.mxu1 %v1649_v18  ;;  %v724_v18 = vld [vmem:[#allocation4 + $0x70] sm:$0xff] }
 0x129   : > { %v2301_v38 = vpop.f32.mrf.mxu0  ;;  %1108 = vmatprep.subr.mxu0 %v1938_v34  ;;  %1690 = vmatprep.subr.mxu1 %v1938_v34 }
 0x12a   : > { %1109 = vmatpush1.msra.mxu0 %v591_v21  ;;  %1722 = vmatpush1.msra.mxu1 %v591_v21  ;;  %v773_v21 = vld [vmem:[#allocation4 + $0x1f8] sm:$0xff] }
 0x12b   : > { %v2305_v39 = vpop.f32.mrf.mxu0  ;;  %1110 = vmatprep.subr.mxu0 %v1938_v34  ;;  %1691 = vmatprep.subr.mxu1 %v1938_v34 }
 0x12c   : > { %1111 = vmatpush1.msra.mxu0 %v2251_v14  ;;  %1723 = vmatpush1.msra.mxu1 %v2251_v14  ;;  %v722_v14 = vld [vmem:[#allocation4 + $0x60] sm:$0xff] }
 0x12d   : > { %v2311_v40 = vpop.f32.mrf.mxu0  ;;  %1112 = vmatprep.subr.mxu0 %v1938_v34  ;;  %1692 = vmatprep.subr.mxu1 %v1938_v34 }
 0x12e   : > { %1113 = vmatpush1.msra.mxu0 %v2259_v17  ;;  %1724 = vmatpush1.msra.mxu1 %v2259_v17  ;;  %v771_v17 = vld [vmem:[#allocation4 + $0x1e8] sm:$0xff] }
 0x12f   : > { %v1673_v41 = vpop.f32.mrf.mxu0  ;;  %1114 = vmatprep.subr.mxu0 %v1938_v34  ;;  %1693 = vmatprep.subr.mxu1 %v1938_v34 }
 0x130   : > { %1115 = vmatpush1.msra.mxu0 %v2241_v10  ;;  %1725 = vmatpush1.msra.mxu1 %v2241_v10  ;;  %v720_v10 = vld [vmem:[#allocation4 + $0x50] sm:$0xff] }
 0x131   : > { %v671_v42 = vpop.f32.mrf.mxu0  ;;  %1116 = vmatprep.subr.mxu0 %v1938_v34  ;;  %1694 = vmatprep.subr.mxu1 %v1938_v34 }
 0x132   : > { %1117 = vmatpush1.msra.mxu0 %v2249_v13  ;;  %1726 = vmatpush1.msra.mxu1 %v2249_v13  ;;  %v769_v13 = vld [vmem:[#allocation4 + $0x1d8] sm:$0xff] }
 0x133   : > { %v1676_v43 = vpop.f32.mrf.mxu0  ;;  %1118 = vmatprep.subr.mxu0 %v1938_v34  ;;  %1695 = vmatprep.subr.mxu1 %v1938_v34 }
 0x134   : > { %1119 = vmatpush1.msra.mxu0 %v2231_v6  ;;  %1727 = vmatpush1.msra.mxu1 %v2231_v6  ;;  %v718_v6 = vld [vmem:[#allocation4 + $0x40] sm:$0xff] }
 0x135   : > { %v681_v44 = vpop.f32.mrf.mxu0  ;;  %1120 = vmatprep.subr.mxu0 %v1938_v34  ;;  %1696 = vmatprep.subr.mxu1 %v1938_v34 }
 0x136   : > { %1121 = vmatpush1.msra.mxu0 %v2239_v9  ;;  %1728 = vmatpush1.msra.mxu1 %v2239_v9  ;;  %v767_v9 = vld [vmem:[#allocation4 + $0x1c8] sm:$0xff] }
 0x137   : > { %v1679_v45 = vpop.f32.mrf.mxu0  ;;  %1122 = vmatprep.subr.mxu0 %v1938_v34  ;;  %1697 = vmatprep.subr.mxu1 %v1938_v34 }
 0x138   : > { %1123 = vmatpush1.msra.mxu0 %v2221_v2  ;;  %1729 = vmatpush1.msra.mxu1 %v2221_v2  ;;  %v716_v2 = vld [vmem:[#allocation4 + $0x30] sm:$0xff] }
 0x139   : > { %v691_v46 = vpop.f32.mrf.mxu0  ;;  %1124 = vmatprep.subr.mxu0 %v1938_v34  ;;  %1698 = vmatprep.subr.mxu1 %v1938_v34 }
 0x13a   : > { %1125 = vmatpush1.msra.mxu0 %v2229_v5  ;;  %1730 = vmatpush1.msra.mxu1 %v2229_v5  ;;  %v765_v5 = vld [vmem:[#allocation4 + $0x1b8] sm:$0xff] }
 0x13b   : > { %v1682_v47 = vpop.f32.mrf.mxu0  ;;  %1126 = vmatprep.subr.mxu0 %v1938_v34  ;;  %1699 = vmatprep.subr.mxu1 %v1938_v34 }
 0x13c   : > { %1127 = vmatpush2.msra.mxu0 %v1682_v47  ;;  %1731 = vmatpush2.msra.mxu1 %v1682_v47  ;;  %v738_v47 = vld [vmem:[#allocation4 + $0xe0] sm:$0xff] }
 0x13d   : > { %v701_v48 = vpop.f32.mrf.mxu0  ;;  %1128 = vmatprep.subr.mxu0 %v1938_v34  ;;  %1700 = vmatprep.subr.mxu1 %v1938_v34 }
 0x13e   : > { %1129 = vmatpush2.msra.mxu0 %v701_v48  ;;  %1732 = vmatpush2.msra.mxu1 %v701_v48  ;;  %v784_v48 = vld [vmem:[#allocation4 + $0x250] sm:$0xff] }
 0x13f   : > { %1130 = vmatprep.subr.mxu0 %v1938_v34  ;;  %1701 = vmatprep.subr.mxu1 %v1938_v34 }
 0x140   : > { %1131 = vmatpush2.msra.mxu0 %v1679_v45  ;;  %1733 = vmatpush2.msra.mxu1 %v1679_v45  ;;  %v739_v45 = vld [vmem:[#allocation4 + $0xe8] sm:$0xff] }
 0x141   : > { %1132 = vmatprep.subr.mxu0 %v1938_v34  ;;  %1702 = vmatprep.subr.mxu1 %v1938_v34 }
 0x142   : > { %1133 = vmatpush2.msra.mxu0 %v691_v46  ;;  %1734 = vmatpush2.msra.mxu1 %v691_v46  ;;  %v785_v46 = vld [vmem:[#allocation4 + $0x258] sm:$0xff] }
 0x143   : > { %1134 = vmatprep.subr.mxu0 %v1938_v34  ;;  %1703 = vmatprep.subr.mxu1 %v1938_v34 }
 0x144   : > { %1135 = vmatpush2.msra.mxu0 %v1676_v43  ;;  %1735 = vmatpush2.msra.mxu1 %v1676_v43  ;;  %v736_v43 = vld [vmem:[#allocation4 + $0xd0] sm:$0xff] }
 0x145   : > { %1136 = vmatprep.subr.mxu0 %v1938_v34  ;;  %1704 = vmatprep.subr.mxu1 %v1938_v34 }
 0x146   : > { %1137 = vmatpush2.msra.mxu0 %v681_v44  ;;  %1736 = vmatpush2.msra.mxu1 %v681_v44  ;;  %v782_v44 = vld [vmem:[#allocation4 + $0x240] sm:$0xff] }
 0x147   : > { %1138 = vmatprep.subr.mxu0 %v1938_v34  ;;  %1705 = vmatprep.subr.mxu1 %v1938_v34 }
 0x148   : > { %1139 = vmatpush2.msra.mxu0 %v1673_v41  ;;  %1737 = vmatpush2.msra.mxu1 %v1673_v41  ;;  %v737_v41 = vld [vmem:[#allocation4 + $0xd8] sm:$0xff] }
 0x149   : > { %1140 = vmatprep.subr.mxu0 %v1938_v34  ;;  %1706 = vmatprep.subr.mxu1 %v1938_v34 }
 0x14a   : > { %1141 = vmatpush2.msra.mxu0 %v671_v42  ;;  %1738 = vmatpush2.msra.mxu1 %v671_v42  ;;  %v783_v42 = vld [vmem:[#allocation4 + $0x248] sm:$0xff] }
 0x14b   : > { %1142 = vmatprep.subr.mxu0 %v1938_v34  ;;  %1707 = vmatprep.subr.mxu1 %v1938_v34 }
 0x14c   : > { %1143 = vmatpush2.msra.mxu0 %v2305_v39  ;;  %1739 = vmatpush2.msra.mxu1 %v2305_v39  ;;  %v734_v39 = vld [vmem:[#allocation4 + $0xc0] sm:$0xff] }
 0x14d   : > { %1144 = vmatprep.subr.mxu0 %v1938_v34  ;;  %1708 = vmatprep.subr.mxu1 %v1938_v34 }
 0x14e   : > { %1145 = vmatpush2.msra.mxu0 %v2311_v40  ;;  %1740 = vmatpush2.msra.mxu1 %v2311_v40  ;;  %v780_v40 = vld [vmem:[#allocation4 + $0x230] sm:$0xff] }
 0x14f   : > { %1146 = vmatprep.subr.mxu0 %v1938_v34  ;;  %1709 = vmatprep.subr.mxu1 %v1938_v34 }
 0x150   : > { %1147 = vmatpush2.msra.mxu0 %v2297_v37  ;;  %1741 = vmatpush2.msra.mxu1 %v2297_v37  ;;  %v735_v37 = vld [vmem:[#allocation4 + $0xc8] sm:$0xff] }
 0x151   : > { %1148 = vmatprep.subr.mxu0 %v1938_v34  ;;  %1710 = vmatprep.subr.mxu1 %v1938_v34 }
 0x152   : > { %1149 = vmatpush2.msra.mxu0 %v2301_v38  ;;  %1742 = vmatpush2.msra.mxu1 %v2301_v38  ;;  %v781_v38 = vld [vmem:[#allocation4 + $0x238] sm:$0xff] }
 0x153   : > { %1150 = vmatprep.subr.mxu0 %v1938_v34  ;;  %1711 = vmatprep.subr.mxu1 %v1938_v34 }
 0x154   : > { %1151 = vmatpush2.msra.mxu0 %v2289_v35  ;;  %1743 = vmatpush2.msra.mxu1 %v2289_v35  ;;  %v732_v35 = vld [vmem:[#allocation4 + $0xb0] sm:$0xff] }
 0x155   : > { %1152 = vmatprep.subr.mxu0 %v1938_v34  ;;  %1712 = vmatprep.subr.mxu1 %v1938_v34 }
 0x156   : > { %1153 = vmatpush2.msra.mxu0 %v2293_v36  ;;  %1744 = vmatpush2.msra.mxu1 %v2293_v36  ;;  %v778_v36 = vld [vmem:[#allocation4 + $0x220] sm:$0xff] }
 0x157   : > { %1154 = vmatprep.subr.mxu0 %v1938_v34  ;;  %1713 = vmatprep.subr.mxu1 %v1938_v34 }
 0x158   : > { %1155 = vmatpush2.msra.mxu0 %v2281_v32  ;;  %1745 = vmatpush2.msra.mxu1 %v2281_v32  ;;  %v733_v32 = vld [vmem:[#allocation4 + $0xb8] sm:$0xff] }
 0x159   : > { %1156 = vmatprep.subr.mxu0 %v1938_v34  ;;  %1714 = vmatprep.subr.mxu1 %v1938_v34  ;;  %v758_v34 = vld [vmem:[#allocation4 + $0x180] sm:$0xff] }
 0x15a   : > { %1157 = vmatpush2.msra.mxu0 %v2285_v33  ;;  %1746 = vmatpush2.msra.mxu1 %v2285_v33  ;;  %v779_v33 = vld [vmem:[#allocation4 + $0x228] sm:$0xff] }
 0x15b   : > { %1159 = vmatmul.mubr.f32.vlgmr.msra.gmra.mxu0 %v710_v49  ;;  %1274 = vmatmul.mubr.f32.vlgmr.msra.gmra.mxu1 %v756_v50  ;;  %v741_v49 = vld [vmem:[#allocation4 + $0xf8] sm:$0xff]  ;;  %v787_v50 = vld [vmem:[#allocation4 + $0x268] sm:$0xff] }
 0x15c   : > { %1163 = vmatprep.mubr.f32.mxu0 %v713_v51  ;;  %1278 = vmatprep.mubr.f32.mxu1 %v759_v52  ;;  %v740_v51 = vld [vmem:[#allocation4 + $0xf0] sm:$0xff]  ;;  %v786_v52 = vld [vmem:[#allocation4 + $0x260] sm:$0xff] }
 0x15f   : > { %1164 = vmatmul.mubr.f32.gmra.mxu0 %v712_v55  ;;  %1279 = vmatmul.mubr.f32.gmra.mxu1 %v758_v34  ;;  %v742_v55 = vld [vmem:[#allocation4 + $0x100] sm:$0xff]  ;;  %v788_v34 = vld [vmem:[#allocation4 + $0x270] sm:$0xff] }
 0x160   : > { %1168 = vmatprep.mubr.f32.mxu0 %v715_v56  ;;  %1283 = vmatprep.mubr.f32.mxu1 %v761_v57  ;;  %v745_v56 = vld [vmem:[#allocation4 + $0x118] sm:$0xff]  ;;  %v791_v57 = vld [vmem:[#allocation4 + $0x288] sm:$0xff] }
 0x163   : > { %1169 = vmatmul.mubr.f32.gmra.mxu0 %v714_v60  ;;  %1284 = vmatmul.mubr.f32.gmra.mxu1 %v760_v61  ;;  %v747_v60 = vld [vmem:[#allocation4 + $0x128] sm:$0xff]  ;;  %v793_v61 = vld [vmem:[#allocation4 + $0x298] sm:$0xff] }
 0x164   : > { %1173 = vmatprep.mubr.f32.mxu0 %v717_v62  ;;  %1288 = vmatprep.mubr.f32.mxu1 %v763_v63  ;;  %v746_v62 = vld [vmem:[#allocation4 + $0x120] sm:$0xff]  ;;  %v792_v63 = vld [vmem:[#allocation4 + $0x290] sm:$0xff] }
 0x167   : > { %1174 = vmatmul.mubr.f32.gmra.mxu0 %v716_v2  ;;  %1289 = vmatmul.mubr.f32.gmra.mxu1 %v762_v3  ;;  %v748_v2 = vld [vmem:[#allocation4 + $0x130] sm:$0xff]  ;;  %v794_v3 = vld [vmem:[#allocation4 + $0x2a0] sm:$0xff] }
 0x168   : > { %1178 = vmatprep.mubr.f32.mxu0 %v719_v4  ;;  %1293 = vmatprep.mubr.f32.mxu1 %v765_v5  ;;  %v751_v4 = vld [vmem:[#allocation4 + $0x148] sm:$0xff]  ;;  %v797_v5 = vld [vmem:[#allocation4 + $0x2b8] sm:$0xff] }
 0x16b   : > { %1179 = vmatmul.mubr.f32.gmra.mxu0 %v718_v6  ;;  %1294 = vmatmul.mubr.f32.gmra.mxu1 %v764_v7  ;;  %v750_v6 = vld [vmem:[#allocation4 + $0x140] sm:$0xff]  ;;  %v796_v7 = vld [vmem:[#allocation4 + $0x2b0] sm:$0xff] }
 0x16c   : > { %1183 = vmatprep.mubr.f32.mxu0 %v721_v8  ;;  %1298 = vmatprep.mubr.f32.mxu1 %v767_v9  ;;  %v753_v8 = vld [vmem:[#allocation4 + $0x158] sm:$0xff]  ;;  %v799_v9 = vld [vmem:[#allocation4 + $0x2c8] sm:$0xff] }
 0x16f   : > { %1184 = vmatmul.mubr.f32.gmra.mxu0 %v720_v10  ;;  %1299 = vmatmul.mubr.f32.gmra.mxu1 %v766_v11  ;;  %v752_v10 = vld [vmem:[#allocation4 + $0x150] sm:$0xff]  ;;  %v798_v11 = vld [vmem:[#allocation4 + $0x2c0] sm:$0xff] }
 0x170   : > { %1188 = vmatprep.mubr.f32.mxu0 %v723_v12  ;;  %1303 = vmatprep.mubr.f32.mxu1 %v769_v13  ;;  %v755_v12 = vld [vmem:[#allocation4 + $0x168] sm:$0xff]  ;;  %v801_v13 = vld [vmem:[#allocation4 + $0x2d8] sm:$0xff] }
 0x173   : > { %1189 = vmatmul.mubr.f32.gmra.mxu0 %v722_v14  ;;  %1304 = vmatmul.mubr.f32.gmra.mxu1 %v768_v15  ;;  %v754_v14 = vld [vmem:[#allocation4 + $0x160] sm:$0xff]  ;;  %v800_v15 = vld [vmem:[#allocation4 + $0x2d0] sm:$0xff] }
 0x174   : > { %1193 = vmatprep.mubr.f32.mxu0 %v725_v16  ;;  %1308 = vmatprep.mubr.f32.mxu1 %v771_v17  ;;  %v803_v16 = vld [vmem:[#allocation4 + $0x2e8] sm:$0xff]  ;;  %v802_v17 = vld [vmem:[#allocation4 + $0x2e0] sm:$0xff] }
 0x177   : > { %1194 = vmatmul.mubr.f32.gmra.mxu0 %v724_v18  ;;  %1309 = vmatmul.mubr.f32.gmra.mxu1 %v770_v19  ;;  %v805_v18 = vld [vmem:[#allocation4 + $0x2f8] sm:$0xff]  ;;  %v804_v19 = vld [vmem:[#allocation4 + $0x2f0] sm:$0xff] }
 0x178   : > { %1198 = vmatprep.mubr.f32.mxu0 %v727_v20  ;;  %1313 = vmatprep.mubr.f32.mxu1 %v773_v21  ;;  %v857_v20 = vpop.permute.xlu0 %856  ;;  %v867_v21 = vpop.permute.xlu1 %866 }
 0x17b   : > { %1199 = vmatmul.mubr.f32.gmra.mxu0 %v726_v22  ;;  %1314 = vmatmul.mubr.f32.gmra.mxu1 %v772_v23 }
 0x17c   : > { %1203 = vmatprep.mubr.f32.mxu0 %v729_v24  ;;  %1318 = vmatprep.mubr.f32.mxu1 %v775_v25  ;;  %v862_v22 = vpop.permute.xlu0 %861  ;;  %v872_v23 = vpop.permute.xlu1 %871 }
 0x17f   : > { %1204 = vmatmul.mubr.f32.gmra.mxu0 %v728_v26  ;;  %1319 = vmatmul.mubr.f32.gmra.mxu1 %v774_v27 }
 0x180   : > { %1208 = vmatprep.mubr.f32.mxu0 %v731_v28  ;;  %1323 = vmatprep.mubr.f32.mxu1 %v777_v29  ;;  %v2407_v24 = vpop.permute.xlu0 %876  ;;  %v2409_v25 = vpop.permute.xlu1 %881 }
 0x183   : > { %1209 = vmatmul.mubr.f32.gmra.mxu0 %v730_v30  ;;  %1324 = vmatmul.mubr.f32.gmra.mxu1 %v776_v31 }
 0x184   : > { %1213 = vmatprep.mubr.f32.mxu0 %v733_v32  ;;  %1328 = vmatprep.mubr.f32.mxu1 %v779_v33  ;;  %v2411_v26 = vpop.permute.xlu0 %886  ;;  %v2413_v27 = vpop.permute.xlu1 %891 }
 0x187   : > { %1214 = vmatmul.mubr.f32.gmra.mxu0 %v732_v35  ;;  %1329 = vmatmul.mubr.f32.gmra.mxu1 %v778_v36 }
 0x188   : > { %1218 = vmatprep.mubr.f32.mxu0 %v735_v37  ;;  %1333 = vmatprep.mubr.f32.mxu1 %v781_v38  ;;  %v2415_v28 = vpop.permute.xlu0 %896  ;;  %v2417_v29 = vpop.permute.xlu1 %901 }
 0x18b   : > { %1219 = vmatmul.mubr.f32.gmra.mxu0 %v734_v39  ;;  %1334 = vmatmul.mubr.f32.gmra.mxu1 %v780_v40 }
 0x18c   : > { %1223 = vmatprep.mubr.f32.mxu0 %v737_v41  ;;  %1338 = vmatprep.mubr.f32.mxu1 %v783_v42  ;;  %v2419_v30 = vpop.permute.xlu0 %906  ;;  %v2421_v31 = vpop.permute.xlu1 %911 }
 0x18f   : > { %1224 = vmatmul.mubr.f32.gmra.mxu0 %v736_v43  ;;  %1339 = vmatmul.mubr.f32.gmra.mxu1 %v782_v44 }
 0x190   : > { %1228 = vmatprep.mubr.f32.mxu0 %v739_v45  ;;  %1343 = vmatprep.mubr.f32.mxu1 %v785_v46  ;;  %v2423_v32 = vpop.permute.xlu0 %916  ;;  %v2425_v33 = vpop.permute.xlu1 %921 }
 0x193   : > { %1229 = vmatmul.mubr.f32.gmra.mxu0 %v738_v47  ;;  %1344 = vmatmul.mubr.f32.gmra.mxu1 %v784_v48 }
 0x194   : > { %1233 = vmatprep.mubr.f32.mxu0 %v741_v49  ;;  %1348 = vmatprep.mubr.f32.mxu1 %v787_v50  ;;  %v2427_v35 = vpop.permute.xlu0 %926  ;;  %v2429_v36 = vpop.permute.xlu1 %931 }
 0x197   : > { %1234 = vmatmul.mubr.f32.gmra.mxu0 %v740_v51  ;;  %1349 = vmatmul.mubr.f32.gmra.mxu1 %v786_v52 }
 0x198   : > { %1238 = vmatprep.mubr.f32.mxu0 %v743_v53  ;;  %1353 = vmatprep.mubr.f32.mxu1 %v789_v54  ;;  %v2431_v37 = vpop.permute.xlu0 %936  ;;  %v2433_v38 = vpop.permute.xlu1 %941 }
 0x19b   : > { %1239 = vmatmul.mubr.f32.gmra.mxu0 %v742_v55  ;;  %1354 = vmatmul.mubr.f32.gmra.mxu1 %v788_v34 }
 0x19c   : > { %1243 = vmatprep.mubr.f32.mxu0 %v745_v56  ;;  %1358 = vmatprep.mubr.f32.mxu1 %v791_v57  ;;  %v2435_v39 = vpop.permute.xlu0 %946  ;;  %v2437_v40 = vpop.permute.xlu1 %951 }
 0x19f   : > { %1244 = vmatmul.mubr.f32.gmra.mxu0 %v744_v58  ;;  %1359 = vmatmul.mubr.f32.gmra.mxu1 %v790_v59 }
 0x1a0   : > { %1248 = vmatprep.mubr.f32.mxu0 %v747_v60  ;;  %1363 = vmatprep.mubr.f32.mxu1 %v793_v61  ;;  %v2440_v41 = vpop.permute.xlu0 %956  ;;  %v2443_v42 = vpop.permute.xlu1 %961 }
 0x1a3   : > { %1249 = vmatmul.mubr.f32.gmra.mxu0 %v746_v62  ;;  %1364 = vmatmul.mubr.f32.gmra.mxu1 %v792_v63 }
 0x1a4   : > { %1253 = vmatprep.mubr.f32.mxu0 %v749_v0  ;;  %1368 = vmatprep.mubr.f32.mxu1 %v795_v1  ;;  %v2445_v43 = vpop.permute.xlu0 %966  ;;  %v972_v44 = vpop.permute.xlu1 %971 }
 0x1a7   : > { %1254 = vmatmul.mubr.f32.gmra.mxu0 %v748_v2  ;;  %1369 = vmatmul.mubr.f32.gmra.mxu1 %v794_v3 }
 0x1a8   : > { %1258 = vmatprep.mubr.f32.mxu0 %v751_v4  ;;  %1373 = vmatprep.mubr.f32.mxu1 %v797_v5  ;;  %v977_v51 = vpop.permute.xlu0 %976  ;;  %v982_v57 = vpop.permute.xlu1 %981 }
 0x1ab   : > { %1259 = vmatmul.mubr.f32.gmra.mxu0 %v750_v6  ;;  %1374 = vmatmul.mubr.f32.gmra.mxu1 %v796_v7 }
 0x1ac   : > { %1263 = vmatprep.mubr.f32.mxu0 %v753_v8  ;;  %1378 = vmatprep.mubr.f32.mxu1 %v799_v9  ;;  %v987_v0 = vpop.permute.xlu0 %986  ;;  %v992_v7 = vpop.permute.xlu1 %991 }
 0x1af   : > { %1264 = vmatmul.mubr.f32.gmra.mxu0 %v752_v10  ;;  %1379 = vmatmul.mubr.f32.gmra.mxu1 %v798_v11 }
 0x1b0   : > { %1268 = vmatprep.mubr.f32.mxu0 %v755_v12  ;;  %1383 = vmatprep.mubr.f32.mxu1 %v801_v13 }
 0x1b3   : > { %1269 = vmatmul.mubr.f32.gmra.mxu0 %v754_v14  ;;  %1384 = vmatmul.mubr.f32.gmra.mxu1 %v800_v15  ;;  %v997_v14 = vpop.permute.xlu0 %996 }
 0x1b4   : > { %1388 = vmatprep.mubr.f32.mxu1 %v803_v16 }
 0x1b7   : > { %1389 = vmatmul.mubr.f32.gmra.mxu1 %v802_v17 }
 0x1b8   : > { %1393 = vmatprep.mubr.f32.mxu1 %v805_v18 }
 0x1bb   : > { %1394 = vmatmul.mubr.f32.gmra.mxu1 %v804_v19 }
 0x21b   : > { %v1160_v45 = vpop.f32.mrf.mxu0  ;;  %v1275_v46 = vpop.f32.mrf.mxu1 }
 0x21c   : > { %v1161_v47 = vadd.f32 %v1160_v45, %v857_v20  ;;  %v1276_v48 = vadd.f32 %v1275_v46, %v972_v44 }
 0x21d   : > { %v1162_v49 = vpop.f32.mrf.mxu0  ;;  %v1277_v50 = vpop.f32.mrf.mxu1 }
 0x21e   : > { %1400 = vst.msk [vmem:[%s2450_s29] sm:$0xff] %vm1399_vm0, %v1161_v47  ;;  %1423 = vst.msk [vmem:[%s2450_s29 + $0xb8] sm:$0xff] %vm1399_vm0, %v1276_v48  ;;  %v1007_v47 = vpop.permute.xlu0 %1006 }
 0x21f   : > { %v1165_v52 = vpop.f32.mrf.mxu0  ;;  %v1280_v53 = vpop.f32.mrf.mxu1 }
 0x220   : > { %v1166_v54 = vadd.f32 %v1165_v52, %v862_v22  ;;  %v1281_v55 = vadd.f32 %v1280_v53, %v977_v51 }
 0x221   : > { %v1167_v34 = vpop.f32.mrf.mxu0  ;;  %v1282_v56 = vpop.f32.mrf.mxu1 }
 0x222   : > { %1401 = vst.msk [vmem:[%s2450_s29 + $0x8] sm:$0xff] %vm1399_vm0, %v1166_v54  ;;  %1424 = vst.msk [vmem:[%s2450_s29 + $0xc0] sm:$0xff] %vm1399_vm0, %v1281_v55 }
 0x223   : > { %v1170_v58 = vpop.f32.mrf.mxu0  ;;  %v1285_v59 = vpop.f32.mrf.mxu1 }
 0x224   : > { %v1171_v60 = vadd.f32 %v1170_v58, %v867_v21  ;;  %v1286_v61 = vadd.f32 %v1285_v59, %v982_v57  ;;  %v1002_v21 = vpop.permute.xlu1 %1001  ;;  %v1017_v58 = vpop.permute.xlu0 %1016 }
 0x225   : > { %v1172_v62 = vpop.f32.mrf.mxu0  ;;  %v1287_v63 = vpop.f32.mrf.mxu1 }
 0x226   : > { %1402 = vst.msk [vmem:[%s2450_s29 + $0x10] sm:$0xff] %vm1399_vm0, %v1171_v60  ;;  %1425 = vst.msk [vmem:[%s2450_s29 + $0xc8] sm:$0xff] %vm1399_vm0, %v1286_v61 }
 0x227   : > { %v1175_v1 = vpop.f32.mrf.mxu0  ;;  %v1290_v2 = vpop.f32.mrf.mxu1 }
 0x228   : > { %v1176_v3 = vadd.f32 %v1175_v1, %v872_v23  ;;  %v1291_v4 = vadd.f32 %v1290_v2, %v987_v0  ;;  %v1012_v53 = vpop.permute.xlu1 %1011 }
 0x229   : > { %v1177_v5 = vpop.f32.mrf.mxu0  ;;  %v1292_v6 = vpop.f32.mrf.mxu1 }
 0x22a   : > { %1403 = vst.msk [vmem:[%s2450_s29 + $0x18] sm:$0xff] %vm1399_vm0, %v1176_v3  ;;  %1426 = vst.msk [vmem:[%s2450_s29 + $0xd0] sm:$0xff] %vm1399_vm0, %v1291_v4  ;;  %v1027_v6 = vpop.permute.xlu0 %1026 }
 0x22b   : > { %v1180_v8 = vpop.f32.mrf.mxu0  ;;  %v1295_v9 = vpop.f32.mrf.mxu1 }
 0x22c   : > { %v1181_v10 = vadd.f32 %v1180_v8, %v2407_v24  ;;  %v1296_v11 = vadd.f32 %v1295_v9, %v992_v7  ;;  %v1022_v0 = vpop.permute.xlu1 %1021 }
 0x22d   : > { %v1182_v12 = vpop.f32.mrf.mxu0  ;;  %v1297_v13 = vpop.f32.mrf.mxu1 }
 0x22e   : > { %1404 = vst.msk [vmem:[%s2450_s29 + $0x20] sm:$0xff] %vm1399_vm0, %v1181_v10  ;;  %1427 = vst.msk [vmem:[%s2450_s29 + $0xd8] sm:$0xff] %vm1399_vm0, %v1296_v11 }
 0x22f   : > { %v1185_v15 = vpop.f32.mrf.mxu0  ;;  %v1300_v16 = vpop.f32.mrf.mxu1 }
 0x230   : > { %v1186_v17 = vadd.f32 %v1185_v15, %v2409_v25  ;;  %v1301_v18 = vadd.f32 %v1300_v16, %v997_v14  ;;  %v1032_v12 = vpop.permute.xlu1 %1031 }
 0x231   : > { %v1187_v19 = vpop.f32.mrf.mxu0  ;;  %v1302_v20 = vpop.f32.mrf.mxu1 }
 0x232   : > { %1405 = vst.msk [vmem:[%s2450_s29 + $0x28] sm:$0xff] %vm1399_vm0, %v1186_v17  ;;  %1428 = vst.msk [vmem:[%s2450_s29 + $0xe0] sm:$0xff] %vm1399_vm0, %v1301_v18  ;;  %v1037_v18 = vpop.permute.xlu0 %1036 }
 0x233   : > { %v1190_v22 = vpop.f32.mrf.mxu0  ;;  %v1305_v23 = vpop.f32.mrf.mxu1 }
 0x234   : > { %v1191_v24 = vadd.f32 %v1190_v22, %v2411_v26  ;;  %v1306_v44 = vadd.f32 %v1305_v23, %v1002_v21 }
 0x235   : > { %v1192_v45 = vpop.f32.mrf.mxu0  ;;  %v1307_v46 = vpop.f32.mrf.mxu1 }
 0x236   : > { %1406 = vst.msk [vmem:[%s2450_s29 + $0x30] sm:$0xff] %vm1399_vm0, %v1191_v24  ;;  %1429 = vst.msk [vmem:[%s2450_s29 + $0xe8] sm:$0xff] %vm1399_vm0, %v1306_v44  ;;  %v1042_v24 = vpop.permute.xlu1 %1041 }
 0x237   : > { %v1195_v25 = vpop.f32.mrf.mxu0  ;;  %v1310_v48 = vpop.f32.mrf.mxu1 }
 0x238   : > { %v1196_v49 = vadd.f32 %v1195_v25, %v2413_v27  ;;  %v1311_v50 = vadd.f32 %v1310_v48, %v1007_v47  ;;  %v1047_v48 = vpop.permute.xlu0 %1046 }
 0x239   : > { %v1197_v51 = vpop.f32.mrf.mxu0  ;;  %v1312_v52 = vpop.f32.mrf.mxu1 }
 0x23a   : > { %1407 = vst.msk [vmem:[%s2450_s29 + $0x38] sm:$0xff] %vm1399_vm0, %v1196_v49  ;;  %1430 = vst.msk [vmem:[%s2450_s29 + $0xf0] sm:$0xff] %vm1399_vm0, %v1311_v50 }
 0x23b   : > { %v1200_v26 = vpop.f32.mrf.mxu0  ;;  %v1315_v54 = vpop.f32.mrf.mxu1 }
 0x23c   : > { %v1201_v55 = vadd.f32 %v1200_v26, %v2415_v28  ;;  %v1316_v34 = vadd.f32 %v1315_v54, %v1012_v53  ;;  %v1052_v26 = vpop.permute.xlu1 %1051 }
 0x23d   : > { %v1202_v56 = vpop.f32.mrf.mxu0  ;;  %v1317_v57 = vpop.f32.mrf.mxu1 }
 0x23e   : > { %1408 = vst.msk [vmem:[%s2450_s29 + $0x40] sm:$0xff] %vm1399_vm0, %v1201_v55  ;;  %1431 = vst.msk [vmem:[%s2450_s29 + $0xf8] sm:$0xff] %vm1399_vm0, %v1316_v34 }
 0x23f   : > { %v1205_v27 = vpop.f32.mrf.mxu0  ;;  %v1320_v59 = vpop.f32.mrf.mxu1 }
 0x240   : > { %v1206_v60 = vadd.f32 %v1205_v27, %v2417_v29  ;;  %v1321_v61 = vadd.f32 %v1320_v59, %v1017_v58  ;;  %v1057_v58 = vpop.permute.xlu0 %1056 }
 0x241   : > { %v1207_v62 = vpop.f32.mrf.mxu0  ;;  %v1322_v63 = vpop.f32.mrf.mxu1 }
 0x242   : > { %1409 = vst.msk [vmem:[%s2450_s29 + $0x48] sm:$0xff] %vm1399_vm0, %v1206_v60  ;;  %1432 = vst.msk [vmem:[%s2450_s29 + $0x100] sm:$0xff] %vm1399_vm0, %v1321_v61  ;;  %v1062_v63 = vpop.permute.xlu1 %1061 }
 0x243   : > { %v1210_v28 = vpop.f32.mrf.mxu0  ;;  %v1325_v1 = vpop.f32.mrf.mxu1 }
 0x244   : > { %v1211_v2 = vadd.f32 %v1210_v28, %v2419_v30  ;;  %v1326_v3 = vadd.f32 %v1325_v1, %v1022_v0 }
 0x245   : > { %v1212_v4 = vpop.f32.mrf.mxu0  ;;  %v1327_v5 = vpop.f32.mrf.mxu1 }
 0x246   : > { %1410 = vst.msk [vmem:[%s2450_s29 + $0x50] sm:$0xff] %vm1399_vm0, %v1211_v2  ;;  %1433 = vst.msk [vmem:[%s2450_s29 + $0x108] sm:$0xff] %vm1399_vm0, %v1326_v3  ;;  %v1067_v4 = vpop.permute.xlu0 %1066 }
 0x247   : > { %v1215_v29 = vpop.f32.mrf.mxu0  ;;  %v1330_v7 = vpop.f32.mrf.mxu1 }
 0x248   : > { %v1216_v8 = vadd.f32 %v1215_v29, %v2421_v31  ;;  %v1331_v9 = vadd.f32 %v1330_v7, %v1027_v6 }
 0x249   : > { %v1217_v10 = vpop.f32.mrf.mxu0  ;;  %v1332_v11 = vpop.f32.mrf.mxu1 }
 0x24a   : > { %1411 = vst.msk [vmem:[%s2450_s29 + $0x58] sm:$0xff] %vm1399_vm0, %v1216_v8  ;;  %1434 = vst.msk [vmem:[%s2450_s29 + $0x110] sm:$0xff] %vm1399_vm0, %v1331_v9  ;;  %v1072_v9 = vpop.permute.xlu1 %1071 }
 0x24b   : > { %v1220_v30 = vpop.f32.mrf.mxu0  ;;  %v1335_v13 = vpop.f32.mrf.mxu1 }
 0x24c   : > { %v1221_v14 = vadd.f32 %v1220_v30, %v2423_v32  ;;  %v1336_v15 = vadd.f32 %v1335_v13, %v1032_v12 }
 0x24d   : > { %v1222_v16 = vpop.f32.mrf.mxu0  ;;  %v1337_v17 = vpop.f32.mrf.mxu1 }
 0x24e   : > { %1412 = vst.msk [vmem:[%s2450_s29 + $0x60] sm:$0xff] %vm1399_vm0, %v1221_v14  ;;  %1435 = vst.msk [vmem:[%s2450_s29 + $0x118] sm:$0xff] %vm1399_vm0, %v1336_v15  ;;  %v1077_v14 = vpop.permute.xlu0 %1076 }
 0x24f   : > { %v1225_v31 = vpop.f32.mrf.mxu0  ;;  %v1340_v19 = vpop.f32.mrf.mxu1 }
 0x250   : > { %v1226_v20 = vadd.f32 %v1225_v31, %v2425_v33  ;;  %v1341_v21 = vadd.f32 %v1340_v19, %v1037_v18  ;;  %v1082_v19 = vpop.permute.xlu1 %1081 }
 0x251   : > { %v1227_v22 = vpop.f32.mrf.mxu0  ;;  %v1342_v23 = vpop.f32.mrf.mxu1 }
 0x252   : > { %1413 = vst.msk [vmem:[%s2450_s29 + $0x68] sm:$0xff] %vm1399_vm0, %v1226_v20  ;;  %1436 = vst.msk [vmem:[%s2450_s29 + $0x120] sm:$0xff] %vm1399_vm0, %v1341_v21 }
 0x253   : > { %v1230_v32 = vpop.f32.mrf.mxu0  ;;  %v1345_v44 = vpop.f32.mrf.mxu1 }
 0x254   : > { %v1231_v45 = vadd.f32 %v1230_v32, %v2427_v35  ;;  %v1346_v46 = vadd.f32 %v1345_v44, %v1042_v24 }
 0x255   : > { %v1232_v47 = vpop.f32.mrf.mxu0  ;;  %v1347_v25 = vpop.f32.mrf.mxu1 }
 0x256   : > { %1414 = vst.msk [vmem:[%s2450_s29 + $0x70] sm:$0xff] %vm1399_vm0, %v1231_v45  ;;  %1437 = vst.msk [vmem:[%s2450_s29 + $0x128] sm:$0xff] %vm1399_vm0, %v1346_v46  ;;  %v1092_v46 = vpop.permute.xlu1 %1091 }
 0x257   : > { %v1235_v33 = vpop.f32.mrf.mxu0  ;;  %v1350_v49 = vpop.f32.mrf.mxu1 }
 0x258   : > { %v1236_v50 = vadd.f32 %v1235_v33, %v2429_v36  ;;  %v1351_v51 = vadd.f32 %v1350_v49, %v1047_v48 }
 0x259   : > { %v1237_v52 = vpop.f32.mrf.mxu0  ;;  %v1352_v53 = vpop.f32.mrf.mxu1 }
 0x25a   : > { %1415 = vst.msk [vmem:[%s2450_s29 + $0x78] sm:$0xff] %vm1399_vm0, %v1236_v50  ;;  %1438 = vst.msk [vmem:[%s2450_s29 + $0x130] sm:$0xff] %vm1399_vm0, %v1351_v51 }
 0x25b   : > { %v1240_v35 = vpop.f32.mrf.mxu0  ;;  %v1355_v54 = vpop.f32.mrf.mxu1 }
 0x25c   : > { %v1241_v55 = vadd.f32 %v1240_v35, %v2431_v37  ;;  %v1356_v34 = vadd.f32 %v1355_v54, %v1052_v26 }
 0x25d   : > { %v1242_v56 = vpop.f32.mrf.mxu0  ;;  %v1357_v57 = vpop.f32.mrf.mxu1 }
 0x25e   : > { %1416 = vst.msk [vmem:[%s2450_s29 + $0x80] sm:$0xff] %vm1399_vm0, %v1241_v55  ;;  %1439 = vst.msk [vmem:[%s2450_s29 + $0x138] sm:$0xff] %vm1399_vm0, %v1356_v34 }
 0x25f   : > { %v1245_v36 = vpop.f32.mrf.mxu0  ;;  %v1360_v27 = vpop.f32.mrf.mxu1 }
 0x260   : > { %v1246_v59 = vadd.f32 %v1245_v36, %v2433_v38  ;;  %v1361_v60 = vadd.f32 %v1360_v27, %v1057_v58 }
 0x261   : > { %v1247_v61 = vpop.f32.mrf.mxu0  ;;  %v1362_v62 = vpop.f32.mrf.mxu1 }
 0x262   : > { %1417 = vst.msk [vmem:[%s2450_s29 + $0x88] sm:$0xff] %vm1399_vm0, %v1246_v59  ;;  %1440 = vst.msk [vmem:[%s2450_s29 + $0x140] sm:$0xff] %vm1399_vm0, %v1361_v60 }
 0x263   : > { %v1250_v37 = vpop.f32.mrf.mxu0  ;;  %v1365_v0 = vpop.f32.mrf.mxu1 }
 0x264   : > { %v1251_v28 = vadd.f32 %v1250_v37, %v2435_v39  ;;  %v1366_v1 = vadd.f32 %v1365_v0, %v1062_v63 }
 0x265   : > { %v1252_v2 = vpop.f32.mrf.mxu0  ;;  %v1367_v3 = vpop.f32.mrf.mxu1 }
 0x266   : > { %1418 = vst.msk [vmem:[%s2450_s29 + $0x90] sm:$0xff] %vm1399_vm0, %v1251_v28  ;;  %1441 = vst.msk [vmem:[%s2450_s29 + $0x148] sm:$0xff] %vm1399_vm0, %v1366_v1 }
 0x267   : > { %v1255_v38 = vpop.f32.mrf.mxu0  ;;  %v1370_v5 = vpop.f32.mrf.mxu1 }
 0x268   : > { %v1256_v6 = vadd.f32 %v1255_v38, %v2437_v40  ;;  %v1371_v29 = vadd.f32 %v1370_v5, %v1067_v4 }
 0x269   : > { %v1257_v7 = vpop.f32.mrf.mxu0  ;;  %v1372_v8 = vpop.f32.mrf.mxu1 }
 0x26a   : > { %1419 = vst.msk [vmem:[%s2450_s29 + $0x98] sm:$0xff] %vm1399_vm0, %v1256_v6  ;;  %1442 = vst.msk [vmem:[%s2450_s29 + $0x150] sm:$0xff] %vm1399_vm0, %v1371_v29 }
 0x26b   : > { %v1260_v39 = vpop.f32.mrf.mxu0  ;;  %v1375_v10 = vpop.f32.mrf.mxu1 }
 0x26c   : > { %v1261_v11 = vadd.f32 %v1260_v39, %v2440_v41  ;;  %v1376_v12 = vadd.f32 %v1375_v10, %v1072_v9 }
 0x26d   : > { %v1262_v30 = vpop.f32.mrf.mxu0  ;;  %v1377_v13 = vpop.f32.mrf.mxu1 }
 0x26e   : > { %1420 = vst.msk [vmem:[%s2450_s29 + $0xa0] sm:$0xff] %vm1399_vm0, %v1261_v11  ;;  %1443 = vst.msk [vmem:[%s2450_s29 + $0x158] sm:$0xff] %vm1399_vm0, %v1376_v12 }
 0x26f   : > { %v1265_v40 = vpop.f32.mrf.mxu0  ;;  %v1380_v15 = vpop.f32.mrf.mxu1 }
 0x270   : > { %v1266_v16 = vadd.f32 %v1265_v40, %v2443_v42  ;;  %v1381_v17 = vadd.f32 %v1380_v15, %v1077_v14  ;;  %v1087_v42 = vpop.permute.xlu0 %1086 }
 0x271   : > { %v1267_v18 = vpop.f32.mrf.mxu0  ;;  %v1382_v31 = vpop.f32.mrf.mxu1 }
 0x272   : > { %1421 = vst.msk [vmem:[%s2450_s29 + $0xa8] sm:$0xff] %vm1399_vm0, %v1266_v16  ;;  %1444 = vst.msk [vmem:[%s2450_s29 + $0x160] sm:$0xff] %vm1399_vm0, %v1381_v17 }
 0x273   : > { %v1270_v41 = vpop.f32.mrf.mxu0  ;;  %v1385_v20 = vpop.f32.mrf.mxu1 }
 0x274   : > { %v1271_v21 = vadd.f32 %v1270_v41, %v2445_v43  ;;  %v1386_v22 = vadd.f32 %v1385_v20, %v1082_v19 }
 0x275   : > { %v1387_v23 = vpop.f32.mrf.mxu1  ;;  %v1272_v24 = vpop.f32.mrf.mxu0 }
 0x276   : > { %1422 = vst.msk [vmem:[%s2450_s29 + $0xb0] sm:$0xff] %vm1399_vm0, %v1271_v21  ;;  %1445 = vst.msk [vmem:[%s2450_s29 + $0x168] sm:$0xff] %vm1399_vm0, %v1386_v22 }
 0x277   : > { %v1390_v32 = vpop.f32.mrf.mxu1 }
 0x278   : > { %v1391_v44 = vadd.f32 %v1390_v32, %v1087_v42 }
 0x279   : > { %v1392_v45 = vpop.f32.mrf.mxu1 }
 0x27a   : > { %1446 = vst.msk [vmem:[%s2450_s29 + $0x170] sm:$0xff] %vm1399_vm0, %v1391_v44 }
 0x27b   : > { %v1395_v47 = vpop.f32.mrf.mxu1 }
 0x27c   : > { %v1396_v25 = vadd.f32 %v1395_v47, %v1092_v46 }
 0x27d   : > { %v1397_v48 = vpop.f32.mrf.mxu1 }
 0x27e   : > { %1447 = vst.msk [vmem:[%s2450_s29 + $0x178] sm:$0xff] %vm1399_vm0, %v1396_v25 }
 0x27f PF: > { %s18_s20 = sadd.s32 1, %s1930_s20   ;;  %s2595_s15 = smov %s1914_s16 }
 0x280   : > { %p15_p4 = scmp.ge.s32.totalorder %s18_s20, 4   ;;  %s2596_s16 = smov %s1918_s17 }
 0x281   : > { %s2597_s17 = smov %s2039_s13  ;;  %s2598_s18 = smov %s1926_s19 }
 0x282   : > { %s2599_s19 = smov %s2601_s28  ;;  %17 = sbr.rel (!%p15_p4) target bundleno = 5 (0x5), region = 80 }
 0x287   :  { %1475 = vsyncpa [#allocation3], 1 }
 0x288   :  { %1477 = vsyncpa [#allocation3 + $0x1], 1 }
 0x289   :  { %1478 = vsyncpa [#allocation5], 1 }

</bundles_post_ra>
